<compile_context>
chip_gen: v6e
topology: v6e:2x2x1
jax: 0.10.0
libtpu: 0.0.40
codegen_flags: <defaults>
</compile_context>

<pallas_src>
import functools
import math

import jax
import jax.numpy as jnp
from jax.experimental import pallas as pl
from jax.experimental.pallas import tpu as pltpu

# Rows of the packed small-vector slab.
_BQ, _BK, _BV, _BO, _G1, _B1, _BF1, _BF2, _G3, _B3 = range(10)
_N_VEC_ROWS = 10
_NEG_LARGE = -1e30  # finite surrogate for -inf (exp underflows to exactly 0 in f32)


def _decoder_layer_kernel(
    y_ref, pad_ref, wqkv_ref, wo_ref, w1_ref, w2_ref, vec_ref,   # inputs
    out_ref,                                                     # output (lane-dense)
    vscr_ref,                                                    # VMEM scratch (H*S, hd)
    *, num_heads, head_dim, atn_mask, has_pad, eps, use_bf16):
    """Fused decoder layer for a (Bt, S, D) batch block."""
    Bt, S, D = y_ref.shape
    F = w1_ref.shape[1]
    H, hd = num_heads, head_dim
    scale = 1.0 / math.sqrt(hd)

    def cast(a):
        return a.astype(jnp.bfloat16) if use_bf16 else a

    def mm(a, b):                       # a @ b, f32 accumulation on the MXU
        return jnp.dot(cast(a), cast(b), preferred_element_type=jnp.float32)

    def mm_nt(a, b):                    # a @ b.T without materializing the transpose
        return jax.lax.dot_general(cast(a), cast(b), (((1,), (1,)), ((), ())),
                                   preferred_element_type=jnp.float32)

    # All row-wise math operates on the flattened (Bt*S, D) slab.
    x2 = y_ref[...].reshape(Bt * S, D).astype(jnp.float32)

    # --- per-head Q/K/V over the whole batch block (static weight-ref column slices) ------
    q_h, k_h, v_h = [], [], []
    for h in range(H):
        c = h * hd
        q_h.append(mm(x2, wqkv_ref[:, c:c + hd]) + vec_ref[_BQ:_BQ + 1, c:c + hd])
        k_h.append(mm(x2, wqkv_ref[:, D + c:D + c + hd]) + vec_ref[_BK:_BK + 1, c:c + hd])
        v_h.append(mm(x2, wqkv_ref[:, 2 * D + c:2 * D + c + hd]) + vec_ref[_BV:_BV + 1, c:c + hd])

    # --- loop-invariant causal mask --------------------------------------------------------
    if atn_mask:
        rid = jax.lax.broadcasted_iota(jnp.int32, (S, S), 0)
        cid = jax.lax.broadcasted_iota(jnp.int32, (S, S), 1)
        causal = cid > rid              # triu(diagonal=1)

    proj_blocks = []
    for b in range(Bt):                 # static loop over batch elements in this block
        r0 = b * S
        if has_pad:
            # pad2d[i, j] = pad[i] * pad[j]  (torch broadcast), built as a rank-1 outer
            # product so no in-kernel transpose is needed; applied AFTER softmax.
            pcol = pad_ref[b].astype(jnp.float32)                       # (S, 1)
            pad2d = jax.lax.dot_general(pcol, pcol, (((1,), (1,)), ((), ())),
                                        preferred_element_type=jnp.float32)
            pad_zero = pad2d == 0.0

        # -- per-head scaled dot-product attention; values land in the scramble scratch ----
        for h in range(H):
            q = q_h[h][r0:r0 + S, :]
            k = k_h[h][r0:r0 + S, :]
            v = v_h[h][r0:r0 + S, :]
            s = mm_nt(q, k) * scale
            if atn_mask:
                s = jnp.where(causal, _NEG_LARGE, s)
            m = jnp.max(s, axis=-1, keepdims=True)
            e = jnp.exp(s - m)
            attn = e * pl.reciprocal(jnp.sum(e, axis=-1, keepdims=True), approx=True)
            if has_pad:
                attn = jnp.where(pad_zero, 0.0, attn)   # torch masked_fill (post-softmax)
            vscr_ref[h * S:(h + 1) * S, :] = mm(attn, v)        # vstack rows (head-major)

        # -- torch "scramble": values.reshape(B, S, H*hd) WITHOUT transposing heads back.
        #    scrambled[:, j*hd:(j+1)*hd] == vstack[j::H, :]; read each chunk with a stride-H
        #    sublane slice and fold it straight into the output projection.
        proj = None
        for j in range(H):
            chunk = vscr_ref[pl.ds(j, S, stride=H), :]          # (S, hd)
            t = mm(chunk, wo_ref[j * hd:(j + 1) * hd, :])
            proj = t if proj is None else proj + t
        proj_blocks.append(proj)

    attn_all = proj_blocks[0] if Bt == 1 else jnp.concatenate(proj_blocks, axis=0)

    # --- output projection bias + residual + LayerNorm1 (dropout1 == identity) -------------
    h1 = attn_all + vec_ref[_BO:_BO + 1, :D] + x2
    mu = jnp.mean(h1, axis=-1, keepdims=True)
    var = jnp.mean((h1 - mu) ** 2, axis=-1, keepdims=True)
    n1 = (h1 - mu) * jax.lax.rsqrt(var + eps) * vec_ref[_G1:_G1 + 1, :D] + vec_ref[_B1:_B1 + 1, :D]

    # --- FFN + residual + LayerNorm3 (FFN dropout and dropout3 == identity) ----------------
    f = mm(n1, w1_ref[...]) + vec_ref[_BF1:_BF1 + 1, :F]
    f = jnp.maximum(f, 0.0)
    f = mm(f, w2_ref[...]) + vec_ref[_BF2:_BF2 + 1, :D]
    h2 = f + n1
    mu2 = jnp.mean(h2, axis=-1, keepdims=True)
    var2 = jnp.mean((h2 - mu2) ** 2, axis=-1, keepdims=True)
    n3 = (h2 - mu2) * jax.lax.rsqrt(var2 + eps) * vec_ref[_G3:_G3 + 1, :D] + vec_ref[_B3:_B3 + 1, :D]

    # --- lane-dense store: flatten each (S, D) block into one (1, S*D) row ------------------
    for b in range(Bt):
        nb = n3[b * S:(b + 1) * S, :]
        flat = jnp.concatenate([nb[r:r + 1, :] for r in range(S)], axis=1)   # (1, S*D)
        out_ref[b] = flat.astype(out_ref.dtype)


def _default_batch_block(batch):
    # v7x has two TensorCores per chip -> keep a 2-way 'parallel' batch grid there;
    # single-TC chips (v5e/v6e) run the whole batch in one fat grid step.
    try:
        kind = jax.devices()[0].device_kind.lower()
        two_cores = ("v7" in kind) or ("7x" in kind)
    except Exception:
        two_cores = False
    if two_cores and batch >= 2 and batch % 2 == 0:
        return batch // 2
    return batch


def decoder_layer_forward(y, pad_mask, params, *, num_heads, atn_mask,
                          use_bf16_matmul=False, batch_block=None):
    B, S, D = y.shape
    H = num_heads
    hd = D // H
    F = params["w1"].shape[1]
    has_pad = pad_mask is not None

    # --- one-time re-layout: torch per-head-interleaved [q|k|v] -> head-grouped [Q|K|V] -----
    w = params["wqkv"].reshape(D, H, 3, hd)
    wqkv_packed = jnp.transpose(w, (0, 2, 1, 3)).reshape(D, 3 * D)
    b3 = jnp.transpose(params["bqkv"].reshape(H, 3, hd), (1, 0, 2)).reshape(3, D)

    # --- pack the 10 tiny vectors into a single (10, max(D, F)) slab (one DMA) --------------
    L = max(D, F)
    def row(v, width):
        v = jnp.asarray(v, jnp.float32).reshape(1, width)
        return v if width == L else jnp.pad(v, ((0, 0), (0, L - width)))
    vec = jnp.concatenate([
        row(b3[0], D), row(b3[1], D), row(b3[2], D),          # bq, bk, bv
        row(params["bo"], D),
        row(params["gamma1"], D), row(params["beta1"], D),
        row(params["bf1"], F),
        row(params["bf2"], D),
        row(params["gamma3"], D), row(params["beta3"], D),
    ], axis=0)
    assert vec.shape == (_N_VEC_ROWS, L)

    wo, w1, w2 = params["wo"], params["w1"], params["w2"]
    if use_bf16_matmul:   # bf16 MXU operands (v6e/v7x); accumulation stays f32 in-kernel
        wqkv_packed = wqkv_packed.astype(jnp.bfloat16)
        wo, w1, w2 = (a.astype(jnp.bfloat16) for a in (wo, w1, w2))

    pad_col = (pad_mask.astype(jnp.float32).reshape(B, S, 1) if has_pad
               else jnp.ones((B, S, 1), jnp.float32))

    # --- batch blocking ----------------------------------------------------------------------
    if batch_block is None:
        batch_block = _default_batch_block(B)
    if B % batch_block:
        batch_block = B
    steps = B // batch_block

    kernel = functools.partial(
        _decoder_layer_kernel, num_heads=H, head_dim=hd,
        atn_mask=atn_mask, has_pad=has_pad, eps=1e-5, use_bf16=use_bf16_matmul)

    wt = lambda i: (0, 0)   # resident weights: constant block index
    out_flat = pl.pallas_call(
        kernel,
        out_shape=jax.ShapeDtypeStruct((B, 1, S * D), jnp.float32),
        grid=(steps,),
        in_specs=[
            pl.BlockSpec((batch_block, S, D), lambda i: (i, 0, 0)),   # y
            pl.BlockSpec((batch_block, S, 1), lambda i: (i, 0, 0)),   # pad mask (column form)
            pl.BlockSpec((D, 3 * D), wt),                             # packed Wq|Wk|Wv
            pl.BlockSpec((D, D), wt),                                 # Wo
            pl.BlockSpec((D, F), wt),                                 # W1
            pl.BlockSpec((F, D), wt),                                 # W2
            pl.BlockSpec((_N_VEC_ROWS, L), wt),                       # packed small vectors
        ],
        out_specs=pl.BlockSpec((batch_block, 1, S * D), lambda i: (i, 0, 0)),
        scratch_shapes=[pltpu.VMEM((H * S, hd), jnp.float32)],        # scramble scratch
        compiler_params=pltpu.CompilerParams(
            dimension_semantics=("parallel",),
            vmem_limit_bytes=32 * 1024 * 1024),
    )(y, pad_col, wqkv_packed, wo, w1, w2, vec)

    return out_flat.reshape(B, S, D)


if __name__ == "__main__":
    # d_model=32, num_heads=4 (head_dim=8), ffn_hidden=64, batch=2, seq=8
    B, S, D, H, F = 2, 8, 32, 4, 64

    key = jax.random.PRNGKey(0)
    keys = jax.random.split(key, 10)

    def init(k, shape, scale=0.05):
        return jax.random.normal(k, shape, jnp.float32) * scale

    params = {
        "wqkv": init(keys[0], (D, 3 * D)),
        "bqkv": init(keys[1], (1, 3 * D)),
        "wo": init(keys[2], (D, D)),
        "bo": init(keys[3], (1, D)),
        "gamma1": jnp.ones((1, D), jnp.float32),
        "beta1": jnp.zeros((1, D), jnp.float32),
        "w1": init(keys[4], (D, F)),
        "bf1": init(keys[5], (1, F)),
        "w2": init(keys[6], (F, D)),
        "bf2": init(keys[7], (1, D)),
        "gamma3": jnp.ones((1, D), jnp.float32),
        "beta3": jnp.zeros((1, D), jnp.float32),
    }

    y = jax.random.normal(keys[8], (B, S, D), jnp.float32)
    pad_mask = jnp.array([[1, 1, 1, 1, 1, 1, 1, 1],
                          [1, 1, 1, 1, 1, 1, 0, 0]], jnp.float32)

    fwd = jax.jit(functools.partial(decoder_layer_forward, num_heads=H, atn_mask=True))
    out = fwd(y, pad_mask, params)
    jax.block_until_ready(out)
    assert out.shape == (B, S, D)
    assert bool(jnp.all(jnp.isfinite(out)))
    print("KERNEL_OK")
</pallas_src>

<mosaic_0001>
module attributes {stable_mosaic.version = 11 : i64} {
  func.func @_decoder_layer_kernel(%arg0: i32, %arg1: memref<2x8x32xf32, #tpu.memory_space<vmem>>, %arg2: memref<2x8x1xf32, #tpu.memory_space<vmem>>, %arg3: memref<32x96xf32, #tpu.memory_space<vmem>>, %arg4: memref<32x32xf32, #tpu.memory_space<vmem>>, %arg5: memref<32x64xf32, #tpu.memory_space<vmem>>, %arg6: memref<64x32xf32, #tpu.memory_space<vmem>>, %arg7: memref<10x64xf32, #tpu.memory_space<vmem>>, %arg8: memref<2x1x256xf32, #tpu.memory_space<vmem>>, %arg9: memref<32x8xf32, #tpu.memory_space<vmem>>) attributes {dimension_semantics = [#tpu.dimension_semantics<parallel>], iteration_bounds = array<i64: 1>, scalar_prefetch = 0 : i64, scratch_operands = 1 : i64, tpu.core_type = #tpu.core_type<tc>, window_params = [{transform_indices = @transform_0, window_bounds = array<i64: 2, 8, 32>}, {transform_indices = @transform_1, window_bounds = array<i64: 2, 8, 1>}, {pipeline_mode = #tpu.pipeline_mode<synchronous>, transform_indices = @transform_2, window_bounds = array<i64: 32, 96>}, {pipeline_mode = #tpu.pipeline_mode<synchronous>, transform_indices = @transform_3, window_bounds = array<i64: 32, 32>}, {pipeline_mode = #tpu.pipeline_mode<synchronous>, transform_indices = @transform_4, window_bounds = array<i64: 32, 64>}, {pipeline_mode = #tpu.pipeline_mode<synchronous>, transform_indices = @transform_5, window_bounds = array<i64: 64, 32>}, {pipeline_mode = #tpu.pipeline_mode<synchronous>, transform_indices = @transform_6, window_bounds = array<i64: 10, 64>}, {transform_indices = @transform_7, window_bounds = array<i64: 2, 1, 256>}]} {
    %c0 = arith.constant 0 : index
    %c0_0 = arith.constant 0 : index
    %c0_1 = arith.constant 0 : index
    %0 = vector.load %arg1[%c0, %c0_0, %c0_1] : memref<2x8x32xf32, #tpu.memory_space<vmem>>, vector<2x8x32xf32>
    %1 = vector.shape_cast %0 : vector<2x8x32xf32> to vector<16x32xf32>
    %c0_2 = arith.constant 0 : index
    %c0_3 = arith.constant 0 : index
    %2 = vector.load %arg3[%c0_2, %c0_3] : memref<32x96xf32, #tpu.memory_space<vmem>>, vector<32x8xf32>
    %cst = arith.constant dense<0.000000e+00> : vector<16x8xf32>
    %3 = tpu.matmul %1, %2, %cst {dimension_numbers = #tpu.dot_dimension_numbers<[1], [0], [0], [1], [0, 0, 1, 1], [], []>} : vector<16x32xf32>, vector<32x8xf32>, vector<16x8xf32> -> vector<16x8xf32>
    %c0_4 = arith.constant 0 : index
    %c0_5 = arith.constant 0 : index
    %4 = vector.load %arg7[%c0_4, %c0_5] : memref<10x64xf32, #tpu.memory_space<vmem>>, vector<1x8xf32>
    %5 = vector.broadcast %4 : vector<1x8xf32> to vector<16x8xf32>
    %6 = arith.addf %3, %5 : vector<16x8xf32>
    %c0_6 = arith.constant 0 : index
    %c32 = arith.constant 32 : index
    %7 = vector.load %arg3[%c0_6, %c32] : memref<32x96xf32, #tpu.memory_space<vmem>>, vector<32x8xf32>
    %cst_7 = arith.constant dense<0.000000e+00> : vector<16x8xf32>
    %8 = tpu.matmul %1, %7, %cst_7 {dimension_numbers = #tpu.dot_dimension_numbers<[1], [0], [0], [1], [0, 0, 1, 1], [], []>} : vector<16x32xf32>, vector<32x8xf32>, vector<16x8xf32> -> vector<16x8xf32>
    %c1 = arith.constant 1 : index
    %c0_8 = arith.constant 0 : index
    %9 = vector.load %arg7[%c1, %c0_8] : memref<10x64xf32, #tpu.memory_space<vmem>>, vector<1x8xf32>
    %10 = vector.broadcast %9 : vector<1x8xf32> to vector<16x8xf32>
    %11 = arith.addf %8, %10 : vector<16x8xf32>
    %c0_9 = arith.constant 0 : index
    %c64 = arith.constant 64 : index
    %12 = vector.load %arg3[%c0_9, %c64] : memref<32x96xf32, #tpu.memory_space<vmem>>, vector<32x8xf32>
    %cst_10 = arith.constant dense<0.000000e+00> : vector<16x8xf32>
    %13 = tpu.matmul %1, %12, %cst_10 {dimension_numbers = #tpu.dot_dimension_numbers<[1], [0], [0], [1], [0, 0, 1, 1], [], []>} : vector<16x32xf32>, vector<32x8xf32>, vector<16x8xf32> -> vector<16x8xf32>
    %c2 = arith.constant 2 : index
    %c0_11 = arith.constant 0 : index
    %14 = vector.load %arg7[%c2, %c0_11] : memref<10x64xf32, #tpu.memory_space<vmem>>, vector<1x8xf32>
    %15 = vector.broadcast %14 : vector<1x8xf32> to vector<16x8xf32>
    %16 = arith.addf %13, %15 : vector<16x8xf32>
    %c0_12 = arith.constant 0 : index
    %c8 = arith.constant 8 : index
    %17 = vector.load %arg3[%c0_12, %c8] : memref<32x96xf32, #tpu.memory_space<vmem>>, vector<32x8xf32>
    %cst_13 = arith.constant dense<0.000000e+00> : vector<16x8xf32>
    %18 = tpu.matmul %1, %17, %cst_13 {dimension_numbers = #tpu.dot_dimension_numbers<[1], [0], [0], [1], [0, 0, 1, 1], [], []>} : vector<16x32xf32>, vector<32x8xf32>, vector<16x8xf32> -> vector<16x8xf32>
    %c0_14 = arith.constant 0 : index
    %c8_15 = arith.constant 8 : index
    %19 = vector.load %arg7[%c0_14, %c8_15] : memref<10x64xf32, #tpu.memory_space<vmem>>, vector<1x8xf32>
    %20 = vector.broadcast %19 : vector<1x8xf32> to vector<16x8xf32>
    %21 = arith.addf %18, %20 : vector<16x8xf32>
    %c0_16 = arith.constant 0 : index
    %c40 = arith.constant 40 : index
    %22 = vector.load %arg3[%c0_16, %c40] : memref<32x96xf32, #tpu.memory_space<vmem>>, vector<32x8xf32>
    %cst_17 = arith.constant dense<0.000000e+00> : vector<16x8xf32>
    %23 = tpu.matmul %1, %22, %cst_17 {dimension_numbers = #tpu.dot_dimension_numbers<[1], [0], [0], [1], [0, 0, 1, 1], [], []>} : vector<16x32xf32>, vector<32x8xf32>, vector<16x8xf32> -> vector<16x8xf32>
    %c1_18 = arith.constant 1 : index
    %c8_19 = arith.constant 8 : index
    %24 = vector.load %arg7[%c1_18, %c8_19] : memref<10x64xf32, #tpu.memory_space<vmem>>, vector<1x8xf32>
    %25 = vector.broadcast %24 : vector<1x8xf32> to vector<16x8xf32>
    %26 = arith.addf %23, %25 : vector<16x8xf32>
    %c0_20 = arith.constant 0 : index
    %c72 = arith.constant 72 : index
    %27 = vector.load %arg3[%c0_20, %c72] : memref<32x96xf32, #tpu.memory_space<vmem>>, vector<32x8xf32>
    %cst_21 = arith.constant dense<0.000000e+00> : vector<16x8xf32>
    %28 = tpu.matmul %1, %27, %cst_21 {dimension_numbers = #tpu.dot_dimension_numbers<[1], [0], [0], [1], [0, 0, 1, 1], [], []>} : vector<16x32xf32>, vector<32x8xf32>, vector<16x8xf32> -> vector<16x8xf32>
    %c2_22 = arith.constant 2 : index
    %c8_23 = arith.constant 8 : index
    %29 = vector.load %arg7[%c2_22, %c8_23] : memref<10x64xf32, #tpu.memory_space<vmem>>, vector<1x8xf32>
    %30 = vector.broadcast %29 : vector<1x8xf32> to vector<16x8xf32>
    %31 = arith.addf %28, %30 : vector<16x8xf32>
    %c0_24 = arith.constant 0 : index
    %c16 = arith.constant 16 : index
    %32 = vector.load %arg3[%c0_24, %c16] : memref<32x96xf32, #tpu.memory_space<vmem>>, vector<32x8xf32>
    %cst_25 = arith.constant dense<0.000000e+00> : vector<16x8xf32>
    %33 = tpu.matmul %1, %32, %cst_25 {dimension_numbers = #tpu.dot_dimension_numbers<[1], [0], [0], [1], [0, 0, 1, 1], [], []>} : vector<16x32xf32>, vector<32x8xf32>, vector<16x8xf32> -> vector<16x8xf32>
    %c0_26 = arith.constant 0 : index
    %c16_27 = arith.constant 16 : index
    %34 = vector.load %arg7[%c0_26, %c16_27] : memref<10x64xf32, #tpu.memory_space<vmem>>, vector<1x8xf32>
    %35 = vector.broadcast %34 : vector<1x8xf32> to vector<16x8xf32>
    %36 = arith.addf %33, %35 : vector<16x8xf32>
    %c0_28 = arith.constant 0 : index
    %c48 = arith.constant 48 : index
    %37 = vector.load %arg3[%c0_28, %c48] : memref<32x96xf32, #tpu.memory_space<vmem>>, vector<32x8xf32>
    %cst_29 = arith.constant dense<0.000000e+00> : vector<16x8xf32>
    %38 = tpu.matmul %1, %37, %cst_29 {dimension_numbers = #tpu.dot_dimension_numbers<[1], [0], [0], [1], [0, 0, 1, 1], [], []>} : vector<16x32xf32>, vector<32x8xf32>, vector<16x8xf32> -> vector<16x8xf32>
    %c1_30 = arith.constant 1 : index
    %c16_31 = arith.constant 16 : index
    %39 = vector.load %arg7[%c1_30, %c16_31] : memref<10x64xf32, #tpu.memory_space<vmem>>, vector<1x8xf32>
    %40 = vector.broadcast %39 : vector<1x8xf32> to vector<16x8xf32>
    %41 = arith.addf %38, %40 : vector<16x8xf32>
    %c0_32 = arith.constant 0 : index
    %c80 = arith.constant 80 : index
    %42 = vector.load %arg3[%c0_32, %c80] : memref<32x96xf32, #tpu.memory_space<vmem>>, vector<32x8xf32>
    %cst_33 = arith.constant dense<0.000000e+00> : vector<16x8xf32>
    %43 = tpu.matmul %1, %42, %cst_33 {dimension_numbers = #tpu.dot_dimension_numbers<[1], [0], [0], [1], [0, 0, 1, 1], [], []>} : vector<16x32xf32>, vector<32x8xf32>, vector<16x8xf32> -> vector<16x8xf32>
    %c2_34 = arith.constant 2 : index
    %c16_35 = arith.constant 16 : index
    %44 = vector.load %arg7[%c2_34, %c16_35] : memref<10x64xf32, #tpu.memory_space<vmem>>, vector<1x8xf32>
    %45 = vector.broadcast %44 : vector<1x8xf32> to vector<16x8xf32>
    %46 = arith.addf %43, %45 : vector<16x8xf32>
    %c0_36 = arith.constant 0 : index
    %c24 = arith.constant 24 : index
    %47 = vector.load %arg3[%c0_36, %c24] : memref<32x96xf32, #tpu.memory_space<vmem>>, vector<32x8xf32>
    %cst_37 = arith.constant dense<0.000000e+00> : vector<16x8xf32>
    %48 = tpu.matmul %1, %47, %cst_37 {dimension_numbers = #tpu.dot_dimension_numbers<[1], [0], [0], [1], [0, 0, 1, 1], [], []>} : vector<16x32xf32>, vector<32x8xf32>, vector<16x8xf32> -> vector<16x8xf32>
    %c0_38 = arith.constant 0 : index
    %c24_39 = arith.constant 24 : index
    %49 = vector.load %arg7[%c0_38, %c24_39] : memref<10x64xf32, #tpu.memory_space<vmem>>, vector<1x8xf32>
    %50 = vector.broadcast %49 : vector<1x8xf32> to vector<16x8xf32>
    %51 = arith.addf %48, %50 : vector<16x8xf32>
    %c0_40 = arith.constant 0 : index
    %c56 = arith.constant 56 : index
    %52 = vector.load %arg3[%c0_40, %c56] : memref<32x96xf32, #tpu.memory_space<vmem>>, vector<32x8xf32>
    %cst_41 = arith.constant dense<0.000000e+00> : vector<16x8xf32>
    %53 = tpu.matmul %1, %52, %cst_41 {dimension_numbers = #tpu.dot_dimension_numbers<[1], [0], [0], [1], [0, 0, 1, 1], [], []>} : vector<16x32xf32>, vector<32x8xf32>, vector<16x8xf32> -> vector<16x8xf32>
    %c1_42 = arith.constant 1 : index
    %c24_43 = arith.constant 24 : index
    %54 = vector.load %arg7[%c1_42, %c24_43] : memref<10x64xf32, #tpu.memory_space<vmem>>, vector<1x8xf32>
    %55 = vector.broadcast %54 : vector<1x8xf32> to vector<16x8xf32>
    %56 = arith.addf %53, %55 : vector<16x8xf32>
    %c0_44 = arith.constant 0 : index
    %c88 = arith.constant 88 : index
    %57 = vector.load %arg3[%c0_44, %c88] : memref<32x96xf32, #tpu.memory_space<vmem>>, vector<32x8xf32>
    %cst_45 = arith.constant dense<0.000000e+00> : vector<16x8xf32>
    %58 = tpu.matmul %1, %57, %cst_45 {dimension_numbers = #tpu.dot_dimension_numbers<[1], [0], [0], [1], [0, 0, 1, 1], [], []>} : vector<16x32xf32>, vector<32x8xf32>, vector<16x8xf32> -> vector<16x8xf32>
    %c2_46 = arith.constant 2 : index
    %c24_47 = arith.constant 24 : index
    %59 = vector.load %arg7[%c2_46, %c24_47] : memref<10x64xf32, #tpu.memory_space<vmem>>, vector<1x8xf32>
    %60 = vector.broadcast %59 : vector<1x8xf32> to vector<16x8xf32>
    %61 = arith.addf %58, %60 : vector<16x8xf32>
    %62 = tpu.iota {dimensions = array<i32: 0>} : vector<8x8xi32>
    %63 = tpu.iota {dimensions = array<i32: 1>} : vector<8x8xi32>
    %64 = arith.cmpi sgt, %63, %62 : vector<8x8xi32>
    %c0_48 = arith.constant 0 : index
    %c0_49 = arith.constant 0 : index
    %c0_50 = arith.constant 0 : index
    %65 = vector.load %arg2[%c0_48, %c0_49, %c0_50] : memref<2x8x1xf32, #tpu.memory_space<vmem>>, vector<1x8x1xf32>
    %66 = vector.shape_cast %65 : vector<1x8x1xf32> to vector<8x1xf32>
    %cst_51 = arith.constant dense<0.000000e+00> : vector<8x8xf32>
    %67 = tpu.matmul %66, %66, %cst_51 {dimension_numbers = #tpu.dot_dimension_numbers<[1], [1], [0], [0], [0, 0, 1, 0], [], []>} : vector<8x1xf32>, vector<8x1xf32>, vector<8x8xf32> -> vector<8x8xf32>
    %cst_52 = arith.constant 0.000000e+00 : f32
    %68 = vector.broadcast %cst_52 : f32 to vector<8x8xf32>
    %69 = arith.cmpf oeq, %67, %68 : vector<8x8xf32>
    %70 = vector.extract_strided_slice %6 {offsets = [0, 0], sizes = [8, 8], strides = [1, 1]} : vector<16x8xf32> to vector<8x8xf32>
    %71 = vector.extract_strided_slice %11 {offsets = [0, 0], sizes = [8, 8], strides = [1, 1]} : vector<16x8xf32> to vector<8x8xf32>
    %72 = vector.extract_strided_slice %16 {offsets = [0, 0], sizes = [8, 8], strides = [1, 1]} : vector<16x8xf32> to vector<8x8xf32>
    %cst_53 = arith.constant dense<0.000000e+00> : vector<8x8xf32>
    %73 = tpu.matmul %70, %71, %cst_53 {dimension_numbers = #tpu.dot_dimension_numbers<[1], [1], [0], [0], [0, 0, 1, 0], [], []>} : vector<8x8xf32>, vector<8x8xf32>, vector<8x8xf32> -> vector<8x8xf32>
    %cst_54 = arith.constant 0.353553385 : f32
    %74 = vector.broadcast %cst_54 : f32 to vector<8x8xf32>
    %75 = arith.mulf %73, %74 : vector<8x8xf32>
    %cst_55 = arith.constant -1.000000e+30 : f32
    %76 = vector.broadcast %cst_55 : f32 to vector<8x8xf32>
    %77 = arith.select %64, %76, %75 : vector<8x8xi1>, vector<8x8xf32>
    %cst_56 = arith.constant dense<0xFF800000> : vector<8xf32>
    %78 = vector.multi_reduction <maximumf>, %77, %cst_56 [1] : vector<8x8xf32> to vector<8xf32>
    %79 = vector.shape_cast %78 : vector<8xf32> to vector<8x1xf32>
    %80 = vector.broadcast %79 : vector<8x1xf32> to vector<8x8xf32>
    %81 = arith.subf %77, %80 : vector<8x8xf32>
    %82 = math.exp %81 : vector<8x8xf32>
    %cst_57 = arith.constant dense<0.000000e+00> : vector<8xf32>
    %83 = vector.multi_reduction <add>, %82, %cst_57 [1] : vector<8x8xf32> to vector<8xf32>
    %84 = vector.shape_cast %83 : vector<8xf32> to vector<8x1xf32>
    %85 = tpu.reciprocal %84 {approx = true} : vector<8x1xf32> -> vector<8x1xf32>
    %86 = vector.broadcast %85 : vector<8x1xf32> to vector<8x8xf32>
    %87 = arith.mulf %82, %86 : vector<8x8xf32>
    %cst_58 = arith.constant 0.000000e+00 : f32
    %88 = vector.broadcast %cst_58 : f32 to vector<8x8xf32>
    %89 = arith.select %69, %88, %87 : vector<8x8xi1>, vector<8x8xf32>
    %cst_59 = arith.constant dense<0.000000e+00> : vector<8x8xf32>
    %90 = tpu.matmul %89, %72, %cst_59 {dimension_numbers = #tpu.dot_dimension_numbers<[1], [0], [0], [1], [0, 0, 1, 1], [], []>} : vector<8x8xf32>, vector<8x8xf32>, vector<8x8xf32> -> vector<8x8xf32>
    %c0_60 = arith.constant 0 : index
    %c0_61 = arith.constant 0 : index
    %91 = vector.load %arg9[%c0_60, %c0_61] : memref<32x8xf32, #tpu.memory_space<vmem>>, vector<8x8xf32>
    tpu.vector_store %arg9[%c0_60, %c0_61], %90 {strides = array<i32>} : memref<32x8xf32, #tpu.memory_space<vmem>>, vector<8x8xf32>,
    %92 = vector.extract_strided_slice %21 {offsets = [0, 0], sizes = [8, 8], strides = [1, 1]} : vector<16x8xf32> to vector<8x8xf32>
    %93 = vector.extract_strided_slice %26 {offsets = [0, 0], sizes = [8, 8], strides = [1, 1]} : vector<16x8xf32> to vector<8x8xf32>
    %94 = vector.extract_strided_slice %31 {offsets = [0, 0], sizes = [8, 8], strides = [1, 1]} : vector<16x8xf32> to vector<8x8xf32>
    %cst_62 = arith.constant dense<0.000000e+00> : vector<8x8xf32>
    %95 = tpu.matmul %92, %93, %cst_62 {dimension_numbers = #tpu.dot_dimension_numbers<[1], [1], [0], [0], [0, 0, 1, 0], [], []>} : vector<8x8xf32>, vector<8x8xf32>, vector<8x8xf32> -> vector<8x8xf32>
    %cst_63 = arith.constant 0.353553385 : f32
    %96 = vector.broadcast %cst_63 : f32 to vector<8x8xf32>
    %97 = arith.mulf %95, %96 : vector<8x8xf32>
    %cst_64 = arith.constant -1.000000e+30 : f32
    %98 = vector.broadcast %cst_64 : f32 to vector<8x8xf32>
    %99 = arith.select %64, %98, %97 : vector<8x8xi1>, vector<8x8xf32>
    %cst_65 = arith.constant dense<0xFF800000> : vector<8xf32>
    %100 = vector.multi_reduction <maximumf>, %99, %cst_65 [1] : vector<8x8xf32> to vector<8xf32>
    %101 = vector.shape_cast %100 : vector<8xf32> to vector<8x1xf32>
    %102 = vector.broadcast %101 : vector<8x1xf32> to vector<8x8xf32>
    %103 = arith.subf %99, %102 : vector<8x8xf32>
    %104 = math.exp %103 : vector<8x8xf32>
    %cst_66 = arith.constant dense<0.000000e+00> : vector<8xf32>
    %105 = vector.multi_reduction <add>, %104, %cst_66 [1] : vector<8x8xf32> to vector<8xf32>
    %106 = vector.shape_cast %105 : vector<8xf32> to vector<8x1xf32>
    %107 = tpu.reciprocal %106 {approx = true} : vector<8x1xf32> -> vector<8x1xf32>
    %108 = vector.broadcast %107 : vector<8x1xf32> to vector<8x8xf32>
    %109 = arith.mulf %104, %108 : vector<8x8xf32>
    %cst_67 = arith.constant 0.000000e+00 : f32
    %110 = vector.broadcast %cst_67 : f32 to vector<8x8xf32>
    %111 = arith.select %69, %110, %109 : vector<8x8xi1>, vector<8x8xf32>
    %cst_68 = arith.constant dense<0.000000e+00> : vector<8x8xf32>
    %112 = tpu.matmul %111, %94, %cst_68 {dimension_numbers = #tpu.dot_dimension_numbers<[1], [0], [0], [1], [0, 0, 1, 1], [], []>} : vector<8x8xf32>, vector<8x8xf32>, vector<8x8xf32> -> vector<8x8xf32>
    %c8_69 = arith.constant 8 : index
    %c0_70 = arith.constant 0 : index
    %113 = vector.load %arg9[%c8_69, %c0_70] : memref<32x8xf32, #tpu.memory_space<vmem>>, vector<8x8xf32>
    tpu.vector_store %arg9[%c8_69, %c0_70], %112 {strides = array<i32>} : memref<32x8xf32, #tpu.memory_space<vmem>>, vector<8x8xf32>,
    %114 = vector.extract_strided_slice %36 {offsets = [0, 0], sizes = [8, 8], strides = [1, 1]} : vector<16x8xf32> to vector<8x8xf32>
    %115 = vector.extract_strided_slice %41 {offsets = [0, 0], sizes = [8, 8], strides = [1, 1]} : vector<16x8xf32> to vector<8x8xf32>
    %116 = vector.extract_strided_slice %46 {offsets = [0, 0], sizes = [8, 8], strides = [1, 1]} : vector<16x8xf32> to vector<8x8xf32>
    %cst_71 = arith.constant dense<0.000000e+00> : vector<8x8xf32>
    %117 = tpu.matmul %114, %115, %cst_71 {dimension_numbers = #tpu.dot_dimension_numbers<[1], [1], [0], [0], [0, 0, 1, 0], [], []>} : vector<8x8xf32>, vector<8x8xf32>, vector<8x8xf32> -> vector<8x8xf32>
    %cst_72 = arith.constant 0.353553385 : f32
    %118 = vector.broadcast %cst_72 : f32 to vector<8x8xf32>
    %119 = arith.mulf %117, %118 : vector<8x8xf32>
    %cst_73 = arith.constant -1.000000e+30 : f32
    %120 = vector.broadcast %cst_73 : f32 to vector<8x8xf32>
    %121 = arith.select %64, %120, %119 : vector<8x8xi1>, vector<8x8xf32>
    %cst_74 = arith.constant dense<0xFF800000> : vector<8xf32>
    %122 = vector.multi_reduction <maximumf>, %121, %cst_74 [1] : vector<8x8xf32> to vector<8xf32>
    %123 = vector.shape_cast %122 : vector<8xf32> to vector<8x1xf32>
    %124 = vector.broadcast %123 : vector<8x1xf32> to vector<8x8xf32>
    %125 = arith.subf %121, %124 : vector<8x8xf32>
    %126 = math.exp %125 : vector<8x8xf32>
    %cst_75 = arith.constant dense<0.000000e+00> : vector<8xf32>
    %127 = vector.multi_reduction <add>, %126, %cst_75 [1] : vector<8x8xf32> to vector<8xf32>
    %128 = vector.shape_cast %127 : vector<8xf32> to vector<8x1xf32>
    %129 = tpu.reciprocal %128 {approx = true} : vector<8x1xf32> -> vector<8x1xf32>
    %130 = vector.broadcast %129 : vector<8x1xf32> to vector<8x8xf32>
    %131 = arith.mulf %126, %130 : vector<8x8xf32>
    %cst_76 = arith.constant 0.000000e+00 : f32
    %132 = vector.broadcast %cst_76 : f32 to vector<8x8xf32>
    %133 = arith.select %69, %132, %131 : vector<8x8xi1>, vector<8x8xf32>
    %cst_77 = arith.constant dense<0.000000e+00> : vector<8x8xf32>
    %134 = tpu.matmul %133, %116, %cst_77 {dimension_numbers = #tpu.dot_dimension_numbers<[1], [0], [0], [1], [0, 0, 1, 1], [], []>} : vector<8x8xf32>, vector<8x8xf32>, vector<8x8xf32> -> vector<8x8xf32>
    %c16_78 = arith.constant 16 : index
    %c0_79 = arith.constant 0 : index
    %135 = vector.load %arg9[%c16_78, %c0_79] : memref<32x8xf32, #tpu.memory_space<vmem>>, vector<8x8xf32>
    tpu.vector_store %arg9[%c16_78, %c0_79], %134 {strides = array<i32>} : memref<32x8xf32, #tpu.memory_space<vmem>>, vector<8x8xf32>,
    %136 = vector.extract_strided_slice %51 {offsets = [0, 0], sizes = [8, 8], strides = [1, 1]} : vector<16x8xf32> to vector<8x8xf32>
    %137 = vector.extract_strided_slice %56 {offsets = [0, 0], sizes = [8, 8], strides = [1, 1]} : vector<16x8xf32> to vector<8x8xf32>
    %138 = vector.extract_strided_slice %61 {offsets = [0, 0], sizes = [8, 8], strides = [1, 1]} : vector<16x8xf32> to vector<8x8xf32>
    %cst_80 = arith.constant dense<0.000000e+00> : vector<8x8xf32>
    %139 = tpu.matmul %136, %137, %cst_80 {dimension_numbers = #tpu.dot_dimension_numbers<[1], [1], [0], [0], [0, 0, 1, 0], [], []>} : vector<8x8xf32>, vector<8x8xf32>, vector<8x8xf32> -> vector<8x8xf32>
    %cst_81 = arith.constant 0.353553385 : f32
    %140 = vector.broadcast %cst_81 : f32 to vector<8x8xf32>
    %141 = arith.mulf %139, %140 : vector<8x8xf32>
    %cst_82 = arith.constant -1.000000e+30 : f32
    %142 = vector.broadcast %cst_82 : f32 to vector<8x8xf32>
    %143 = arith.select %64, %142, %141 : vector<8x8xi1>, vector<8x8xf32>
    %cst_83 = arith.constant dense<0xFF800000> : vector<8xf32>
    %144 = vector.multi_reduction <maximumf>, %143, %cst_83 [1] : vector<8x8xf32> to vector<8xf32>
    %145 = vector.shape_cast %144 : vector<8xf32> to vector<8x1xf32>
    %146 = vector.broadcast %145 : vector<8x1xf32> to vector<8x8xf32>
    %147 = arith.subf %143, %146 : vector<8x8xf32>
    %148 = math.exp %147 : vector<8x8xf32>
    %cst_84 = arith.constant dense<0.000000e+00> : vector<8xf32>
    %149 = vector.multi_reduction <add>, %148, %cst_84 [1] : vector<8x8xf32> to vector<8xf32>
    %150 = vector.shape_cast %149 : vector<8xf32> to vector<8x1xf32>
    %151 = tpu.reciprocal %150 {approx = true} : vector<8x1xf32> -> vector<8x1xf32>
    %152 = vector.broadcast %151 : vector<8x1xf32> to vector<8x8xf32>
    %153 = arith.mulf %148, %152 : vector<8x8xf32>
    %cst_85 = arith.constant 0.000000e+00 : f32
    %154 = vector.broadcast %cst_85 : f32 to vector<8x8xf32>
    %155 = arith.select %69, %154, %153 : vector<8x8xi1>, vector<8x8xf32>
    %cst_86 = arith.constant dense<0.000000e+00> : vector<8x8xf32>
    %156 = tpu.matmul %155, %138, %cst_86 {dimension_numbers = #tpu.dot_dimension_numbers<[1], [0], [0], [1], [0, 0, 1, 1], [], []>} : vector<8x8xf32>, vector<8x8xf32>, vector<8x8xf32> -> vector<8x8xf32>
    %c24_87 = arith.constant 24 : index
    %c0_88 = arith.constant 0 : index
    %157 = vector.load %arg9[%c24_87, %c0_88] : memref<32x8xf32, #tpu.memory_space<vmem>>, vector<8x8xf32>
    tpu.vector_store %arg9[%c24_87, %c0_88], %156 {strides = array<i32>} : memref<32x8xf32, #tpu.memory_space<vmem>>, vector<8x8xf32>,
    %c0_89 = arith.constant 0 : index
    %c0_90 = arith.constant 0 : index
    %158 = tpu.strided_load %arg9[%c0_89, %c0_90] {strides = array<i32: 4, 1>} : memref<32x8xf32, #tpu.memory_space<vmem>>, vector<8x8xf32>
    %c0_91 = arith.constant 0 : index
    %c0_92 = arith.constant 0 : index
    %159 = vector.load %arg4[%c0_91, %c0_92] : memref<32x32xf32, #tpu.memory_space<vmem>>, vector<8x32xf32>
    %cst_93 = arith.constant dense<0.000000e+00> : vector<8x32xf32>
    %160 = tpu.matmul %158, %159, %cst_93 {dimension_numbers = #tpu.dot_dimension_numbers<[1], [0], [0], [1], [0, 0, 1, 1], [], []>} : vector<8x8xf32>, vector<8x32xf32>, vector<8x32xf32> -> vector<8x32xf32>
    %c1_94 = arith.constant 1 : index
    %c0_95 = arith.constant 0 : index
    %161 = tpu.strided_load %arg9[%c1_94, %c0_95] {strides = array<i32: 4, 1>} : memref<32x8xf32, #tpu.memory_space<vmem>>, vector<8x8xf32>
    %c8_96 = arith.constant 8 : index
    %c0_97 = arith.constant 0 : index
    %162 = vector.load %arg4[%c8_96, %c0_97] : memref<32x32xf32, #tpu.memory_space<vmem>>, vector<8x32xf32>
    %cst_98 = arith.constant dense<0.000000e+00> : vector<8x32xf32>
    %163 = tpu.matmul %161, %162, %cst_98 {dimension_numbers = #tpu.dot_dimension_numbers<[1], [0], [0], [1], [0, 0, 1, 1], [], []>} : vector<8x8xf32>, vector<8x32xf32>, vector<8x32xf32> -> vector<8x32xf32>
    %164 = arith.addf %160, %163 : vector<8x32xf32>
    %c2_99 = arith.constant 2 : index
    %c0_100 = arith.constant 0 : index
    %165 = tpu.strided_load %arg9[%c2_99, %c0_100] {strides = array<i32: 4, 1>} : memref<32x8xf32, #tpu.memory_space<vmem>>, vector<8x8xf32>
    %c16_101 = arith.constant 16 : index
    %c0_102 = arith.constant 0 : index
    %166 = vector.load %arg4[%c16_101, %c0_102] : memref<32x32xf32, #tpu.memory_space<vmem>>, vector<8x32xf32>
    %cst_103 = arith.constant dense<0.000000e+00> : vector<8x32xf32>
    %167 = tpu.matmul %165, %166, %cst_103 {dimension_numbers = #tpu.dot_dimension_numbers<[1], [0], [0], [1], [0, 0, 1, 1], [], []>} : vector<8x8xf32>, vector<8x32xf32>, vector<8x32xf32> -> vector<8x32xf32>
    %168 = arith.addf %164, %167 : vector<8x32xf32>
    %c3 = arith.constant 3 : index
    %c0_104 = arith.constant 0 : index
    %169 = tpu.strided_load %arg9[%c3, %c0_104] {strides = array<i32: 4, 1>} : memref<32x8xf32, #tpu.memory_space<vmem>>, vector<8x8xf32>
    %c24_105 = arith.constant 24 : index
    %c0_106 = arith.constant 0 : index
    %170 = vector.load %arg4[%c24_105, %c0_106] : memref<32x32xf32, #tpu.memory_space<vmem>>, vector<8x32xf32>
    %cst_107 = arith.constant dense<0.000000e+00> : vector<8x32xf32>
    %171 = tpu.matmul %169, %170, %cst_107 {dimension_numbers = #tpu.dot_dimension_numbers<[1], [0], [0], [1], [0, 0, 1, 1], [], []>} : vector<8x8xf32>, vector<8x32xf32>, vector<8x32xf32> -> vector<8x32xf32>
    %172 = arith.addf %168, %171 : vector<8x32xf32>
    %c1_108 = arith.constant 1 : index
    %c0_109 = arith.constant 0 : index
    %c0_110 = arith.constant 0 : index
    %173 = vector.load %arg2[%c1_108, %c0_109, %c0_110] : memref<2x8x1xf32, #tpu.memory_space<vmem>>, vector<1x8x1xf32>
    %174 = vector.shape_cast %173 : vector<1x8x1xf32> to vector<8x1xf32>
    %cst_111 = arith.constant dense<0.000000e+00> : vector<8x8xf32>
    %175 = tpu.matmul %174, %174, %cst_111 {dimension_numbers = #tpu.dot_dimension_numbers<[1], [1], [0], [0], [0, 0, 1, 0], [], []>} : vector<8x1xf32>, vector<8x1xf32>, vector<8x8xf32> -> vector<8x8xf32>
    %cst_112 = arith.constant 0.000000e+00 : f32
    %176 = vector.broadcast %cst_112 : f32 to vector<8x8xf32>
    %177 = arith.cmpf oeq, %175, %176 : vector<8x8xf32>
    %178 = vector.extract_strided_slice %6 {offsets = [8, 0], sizes = [8, 8], strides = [1, 1]} : vector<16x8xf32> to vector<8x8xf32>
    %179 = vector.extract_strided_slice %11 {offsets = [8, 0], sizes = [8, 8], strides = [1, 1]} : vector<16x8xf32> to vector<8x8xf32>
    %180 = vector.extract_strided_slice %16 {offsets = [8, 0], sizes = [8, 8], strides = [1, 1]} : vector<16x8xf32> to vector<8x8xf32>
    %cst_113 = arith.constant dense<0.000000e+00> : vector<8x8xf32>
    %181 = tpu.matmul %178, %179, %cst_113 {dimension_numbers = #tpu.dot_dimension_numbers<[1], [1], [0], [0], [0, 0, 1, 0], [], []>} : vector<8x8xf32>, vector<8x8xf32>, vector<8x8xf32> -> vector<8x8xf32>
    %cst_114 = arith.constant 0.353553385 : f32
    %182 = vector.broadcast %cst_114 : f32 to vector<8x8xf32>
    %183 = arith.mulf %181, %182 : vector<8x8xf32>
    %cst_115 = arith.constant -1.000000e+30 : f32
    %184 = vector.broadcast %cst_115 : f32 to vector<8x8xf32>
    %185 = arith.select %64, %184, %183 : vector<8x8xi1>, vector<8x8xf32>
    %cst_116 = arith.constant dense<0xFF800000> : vector<8xf32>
    %186 = vector.multi_reduction <maximumf>, %185, %cst_116 [1] : vector<8x8xf32> to vector<8xf32>
    %187 = vector.shape_cast %186 : vector<8xf32> to vector<8x1xf32>
    %188 = vector.broadcast %187 : vector<8x1xf32> to vector<8x8xf32>
    %189 = arith.subf %185, %188 : vector<8x8xf32>
    %190 = math.exp %189 : vector<8x8xf32>
    %cst_117 = arith.constant dense<0.000000e+00> : vector<8xf32>
    %191 = vector.multi_reduction <add>, %190, %cst_117 [1] : vector<8x8xf32> to vector<8xf32>
    %192 = vector.shape_cast %191 : vector<8xf32> to vector<8x1xf32>
    %193 = tpu.reciprocal %192 {approx = true} : vector<8x1xf32> -> vector<8x1xf32>
    %194 = vector.broadcast %193 : vector<8x1xf32> to vector<8x8xf32>
    %195 = arith.mulf %190, %194 : vector<8x8xf32>
    %cst_118 = arith.constant 0.000000e+00 : f32
    %196 = vector.broadcast %cst_118 : f32 to vector<8x8xf32>
    %197 = arith.select %177, %196, %195 : vector<8x8xi1>, vector<8x8xf32>
    %cst_119 = arith.constant dense<0.000000e+00> : vector<8x8xf32>
    %198 = tpu.matmul %197, %180, %cst_119 {dimension_numbers = #tpu.dot_dimension_numbers<[1], [0], [0], [1], [0, 0, 1, 1], [], []>} : vector<8x8xf32>, vector<8x8xf32>, vector<8x8xf32> -> vector<8x8xf32>
    %c0_120 = arith.constant 0 : index
    %c0_121 = arith.constant 0 : index
    %199 = vector.load %arg9[%c0_120, %c0_121] : memref<32x8xf32, #tpu.memory_space<vmem>>, vector<8x8xf32>
    tpu.vector_store %arg9[%c0_120, %c0_121], %198 {strides = array<i32>} : memref<32x8xf32, #tpu.memory_space<vmem>>, vector<8x8xf32>,
    %200 = vector.extract_strided_slice %21 {offsets = [8, 0], sizes = [8, 8], strides = [1, 1]} : vector<16x8xf32> to vector<8x8xf32>
    %201 = vector.extract_strided_slice %26 {offsets = [8, 0], sizes = [8, 8], strides = [1, 1]} : vector<16x8xf32> to vector<8x8xf32>
    %202 = vector.extract_strided_slice %31 {offsets = [8, 0], sizes = [8, 8], strides = [1, 1]} : vector<16x8xf32> to vector<8x8xf32>
    %cst_122 = arith.constant dense<0.000000e+00> : vector<8x8xf32>
    %203 = tpu.matmul %200, %201, %cst_122 {dimension_numbers = #tpu.dot_dimension_numbers<[1], [1], [0], [0], [0, 0, 1, 0], [], []>} : vector<8x8xf32>, vector<8x8xf32>, vector<8x8xf32> -> vector<8x8xf32>
    %cst_123 = arith.constant 0.353553385 : f32
    %204 = vector.broadcast %cst_123 : f32 to vector<8x8xf32>
    %205 = arith.mulf %203, %204 : vector<8x8xf32>
    %cst_124 = arith.constant -1.000000e+30 : f32
    %206 = vector.broadcast %cst_124 : f32 to vector<8x8xf32>
    %207 = arith.select %64, %206, %205 : vector<8x8xi1>, vector<8x8xf32>
    %cst_125 = arith.constant dense<0xFF800000> : vector<8xf32>
    %208 = vector.multi_reduction <maximumf>, %207, %cst_125 [1] : vector<8x8xf32> to vector<8xf32>
    %209 = vector.shape_cast %208 : vector<8xf32> to vector<8x1xf32>
    %210 = vector.broadcast %209 : vector<8x1xf32> to vector<8x8xf32>
    %211 = arith.subf %207, %210 : vector<8x8xf32>
    %212 = math.exp %211 : vector<8x8xf32>
    %cst_126 = arith.constant dense<0.000000e+00> : vector<8xf32>
    %213 = vector.multi_reduction <add>, %212, %cst_126 [1] : vector<8x8xf32> to vector<8xf32>
    %214 = vector.shape_cast %213 : vector<8xf32> to vector<8x1xf32>
    %215 = tpu.reciprocal %214 {approx = true} : vector<8x1xf32> -> vector<8x1xf32>
    %216 = vector.broadcast %215 : vector<8x1xf32> to vector<8x8xf32>
    %217 = arith.mulf %212, %216 : vector<8x8xf32>
    %cst_127 = arith.constant 0.000000e+00 : f32
    %218 = vector.broadcast %cst_127 : f32 to vector<8x8xf32>
    %219 = arith.select %177, %218, %217 : vector<8x8xi1>, vector<8x8xf32>
    %cst_128 = arith.constant dense<0.000000e+00> : vector<8x8xf32>
    %220 = tpu.matmul %219, %202, %cst_128 {dimension_numbers = #tpu.dot_dimension_numbers<[1], [0], [0], [1], [0, 0, 1, 1], [], []>} : vector<8x8xf32>, vector<8x8xf32>, vector<8x8xf32> -> vector<8x8xf32>
    %c8_129 = arith.constant 8 : index
    %c0_130 = arith.constant 0 : index
    %221 = vector.load %arg9[%c8_129, %c0_130] : memref<32x8xf32, #tpu.memory_space<vmem>>, vector<8x8xf32>
    tpu.vector_store %arg9[%c8_129, %c0_130], %220 {strides = array<i32>} : memref<32x8xf32, #tpu.memory_space<vmem>>, vector<8x8xf32>,
    %222 = vector.extract_strided_slice %36 {offsets = [8, 0], sizes = [8, 8], strides = [1, 1]} : vector<16x8xf32> to vector<8x8xf32>
    %223 = vector.extract_strided_slice %41 {offsets = [8, 0], sizes = [8, 8], strides = [1, 1]} : vector<16x8xf32> to vector<8x8xf32>
    %224 = vector.extract_strided_slice %46 {offsets = [8, 0], sizes = [8, 8], strides = [1, 1]} : vector<16x8xf32> to vector<8x8xf32>
    %cst_131 = arith.constant dense<0.000000e+00> : vector<8x8xf32>
    %225 = tpu.matmul %222, %223, %cst_131 {dimension_numbers = #tpu.dot_dimension_numbers<[1], [1], [0], [0], [0, 0, 1, 0], [], []>} : vector<8x8xf32>, vector<8x8xf32>, vector<8x8xf32> -> vector<8x8xf32>
    %cst_132 = arith.constant 0.353553385 : f32
    %226 = vector.broadcast %cst_132 : f32 to vector<8x8xf32>
    %227 = arith.mulf %225, %226 : vector<8x8xf32>
    %cst_133 = arith.constant -1.000000e+30 : f32
    %228 = vector.broadcast %cst_133 : f32 to vector<8x8xf32>
    %229 = arith.select %64, %228, %227 : vector<8x8xi1>, vector<8x8xf32>
    %cst_134 = arith.constant dense<0xFF800000> : vector<8xf32>
    %230 = vector.multi_reduction <maximumf>, %229, %cst_134 [1] : vector<8x8xf32> to vector<8xf32>
    %231 = vector.shape_cast %230 : vector<8xf32> to vector<8x1xf32>
    %232 = vector.broadcast %231 : vector<8x1xf32> to vector<8x8xf32>
    %233 = arith.subf %229, %232 : vector<8x8xf32>
    %234 = math.exp %233 : vector<8x8xf32>
    %cst_135 = arith.constant dense<0.000000e+00> : vector<8xf32>
    %235 = vector.multi_reduction <add>, %234, %cst_135 [1] : vector<8x8xf32> to vector<8xf32>
    %236 = vector.shape_cast %235 : vector<8xf32> to vector<8x1xf32>
    %237 = tpu.reciprocal %236 {approx = true} : vector<8x1xf32> -> vector<8x1xf32>
    %238 = vector.broadcast %237 : vector<8x1xf32> to vector<8x8xf32>
    %239 = arith.mulf %234, %238 : vector<8x8xf32>
    %cst_136 = arith.constant 0.000000e+00 : f32
    %240 = vector.broadcast %cst_136 : f32 to vector<8x8xf32>
    %241 = arith.select %177, %240, %239 : vector<8x8xi1>, vector<8x8xf32>
    %cst_137 = arith.constant dense<0.000000e+00> : vector<8x8xf32>
    %242 = tpu.matmul %241, %224, %cst_137 {dimension_numbers = #tpu.dot_dimension_numbers<[1], [0], [0], [1], [0, 0, 1, 1], [], []>} : vector<8x8xf32>, vector<8x8xf32>, vector<8x8xf32> -> vector<8x8xf32>
    %c16_138 = arith.constant 16 : index
    %c0_139 = arith.constant 0 : index
    %243 = vector.load %arg9[%c16_138, %c0_139] : memref<32x8xf32, #tpu.memory_space<vmem>>, vector<8x8xf32>
    tpu.vector_store %arg9[%c16_138, %c0_139], %242 {strides = array<i32>} : memref<32x8xf32, #tpu.memory_space<vmem>>, vector<8x8xf32>,
    %244 = vector.extract_strided_slice %51 {offsets = [8, 0], sizes = [8, 8], strides = [1, 1]} : vector<16x8xf32> to vector<8x8xf32>
    %245 = vector.extract_strided_slice %56 {offsets = [8, 0], sizes = [8, 8], strides = [1, 1]} : vector<16x8xf32> to vector<8x8xf32>
    %246 = vector.extract_strided_slice %61 {offsets = [8, 0], sizes = [8, 8], strides = [1, 1]} : vector<16x8xf32> to vector<8x8xf32>
    %cst_140 = arith.constant dense<0.000000e+00> : vector<8x8xf32>
    %247 = tpu.matmul %244, %245, %cst_140 {dimension_numbers = #tpu.dot_dimension_numbers<[1], [1], [0], [0], [0, 0, 1, 0], [], []>} : vector<8x8xf32>, vector<8x8xf32>, vector<8x8xf32> -> vector<8x8xf32>
    %cst_141 = arith.constant 0.353553385 : f32
    %248 = vector.broadcast %cst_141 : f32 to vector<8x8xf32>
    %249 = arith.mulf %247, %248 : vector<8x8xf32>
    %cst_142 = arith.constant -1.000000e+30 : f32
    %250 = vector.broadcast %cst_142 : f32 to vector<8x8xf32>
    %251 = arith.select %64, %250, %249 : vector<8x8xi1>, vector<8x8xf32>
    %cst_143 = arith.constant dense<0xFF800000> : vector<8xf32>
    %252 = vector.multi_reduction <maximumf>, %251, %cst_143 [1] : vector<8x8xf32> to vector<8xf32>
    %253 = vector.shape_cast %252 : vector<8xf32> to vector<8x1xf32>
    %254 = vector.broadcast %253 : vector<8x1xf32> to vector<8x8xf32>
    %255 = arith.subf %251, %254 : vector<8x8xf32>
    %256 = math.exp %255 : vector<8x8xf32>
    %cst_144 = arith.constant dense<0.000000e+00> : vector<8xf32>
    %257 = vector.multi_reduction <add>, %256, %cst_144 [1] : vector<8x8xf32> to vector<8xf32>
    %258 = vector.shape_cast %257 : vector<8xf32> to vector<8x1xf32>
    %259 = tpu.reciprocal %258 {approx = true} : vector<8x1xf32> -> vector<8x1xf32>
    %260 = vector.broadcast %259 : vector<8x1xf32> to vector<8x8xf32>
    %261 = arith.mulf %256, %260 : vector<8x8xf32>
    %cst_145 = arith.constant 0.000000e+00 : f32
    %262 = vector.broadcast %cst_145 : f32 to vector<8x8xf32>
    %263 = arith.select %177, %262, %261 : vector<8x8xi1>, vector<8x8xf32>
    %cst_146 = arith.constant dense<0.000000e+00> : vector<8x8xf32>
    %264 = tpu.matmul %263, %246, %cst_146 {dimension_numbers = #tpu.dot_dimension_numbers<[1], [0], [0], [1], [0, 0, 1, 1], [], []>} : vector<8x8xf32>, vector<8x8xf32>, vector<8x8xf32> -> vector<8x8xf32>
    %c24_147 = arith.constant 24 : index
    %c0_148 = arith.constant 0 : index
    %265 = vector.load %arg9[%c24_147, %c0_148] : memref<32x8xf32, #tpu.memory_space<vmem>>, vector<8x8xf32>
    tpu.vector_store %arg9[%c24_147, %c0_148], %264 {strides = array<i32>} : memref<32x8xf32, #tpu.memory_space<vmem>>, vector<8x8xf32>,
    %c0_149 = arith.constant 0 : index
    %c0_150 = arith.constant 0 : index
    %266 = tpu.strided_load %arg9[%c0_149, %c0_150] {strides = array<i32: 4, 1>} : memref<32x8xf32, #tpu.memory_space<vmem>>, vector<8x8xf32>
    %c0_151 = arith.constant 0 : index
    %c0_152 = arith.constant 0 : index
    %267 = vector.load %arg4[%c0_151, %c0_152] : memref<32x32xf32, #tpu.memory_space<vmem>>, vector<8x32xf32>
    %cst_153 = arith.constant dense<0.000000e+00> : vector<8x32xf32>
    %268 = tpu.matmul %266, %267, %cst_153 {dimension_numbers = #tpu.dot_dimension_numbers<[1], [0], [0], [1], [0, 0, 1, 1], [], []>} : vector<8x8xf32>, vector<8x32xf32>, vector<8x32xf32> -> vector<8x32xf32>
    %c1_154 = arith.constant 1 : index
    %c0_155 = arith.constant 0 : index
    %269 = tpu.strided_load %arg9[%c1_154, %c0_155] {strides = array<i32: 4, 1>} : memref<32x8xf32, #tpu.memory_space<vmem>>, vector<8x8xf32>
    %c8_156 = arith.constant 8 : index
    %c0_157 = arith.constant 0 : index
    %270 = vector.load %arg4[%c8_156, %c0_157] : memref<32x32xf32, #tpu.memory_space<vmem>>, vector<8x32xf32>
    %cst_158 = arith.constant dense<0.000000e+00> : vector<8x32xf32>
    %271 = tpu.matmul %269, %270, %cst_158 {dimension_numbers = #tpu.dot_dimension_numbers<[1], [0], [0], [1], [0, 0, 1, 1], [], []>} : vector<8x8xf32>, vector<8x32xf32>, vector<8x32xf32> -> vector<8x32xf32>
    %272 = arith.addf %268, %271 : vector<8x32xf32>
    %c2_159 = arith.constant 2 : index
    %c0_160 = arith.constant 0 : index
    %273 = tpu.strided_load %arg9[%c2_159, %c0_160] {strides = array<i32: 4, 1>} : memref<32x8xf32, #tpu.memory_space<vmem>>, vector<8x8xf32>
    %c16_161 = arith.constant 16 : index
    %c0_162 = arith.constant 0 : index
    %274 = vector.load %arg4[%c16_161, %c0_162] : memref<32x32xf32, #tpu.memory_space<vmem>>, vector<8x32xf32>
    %cst_163 = arith.constant dense<0.000000e+00> : vector<8x32xf32>
    %275 = tpu.matmul %273, %274, %cst_163 {dimension_numbers = #tpu.dot_dimension_numbers<[1], [0], [0], [1], [0, 0, 1, 1], [], []>} : vector<8x8xf32>, vector<8x32xf32>, vector<8x32xf32> -> vector<8x32xf32>
    %276 = arith.addf %272, %275 : vector<8x32xf32>
    %c3_164 = arith.constant 3 : index
    %c0_165 = arith.constant 0 : index
    %277 = tpu.strided_load %arg9[%c3_164, %c0_165] {strides = array<i32: 4, 1>} : memref<32x8xf32, #tpu.memory_space<vmem>>, vector<8x8xf32>
    %c24_166 = arith.constant 24 : index
    %c0_167 = arith.constant 0 : index
    %278 = vector.load %arg4[%c24_166, %c0_167] : memref<32x32xf32, #tpu.memory_space<vmem>>, vector<8x32xf32>
    %cst_168 = arith.constant dense<0.000000e+00> : vector<8x32xf32>
    %279 = tpu.matmul %277, %278, %cst_168 {dimension_numbers = #tpu.dot_dimension_numbers<[1], [0], [0], [1], [0, 0, 1, 1], [], []>} : vector<8x8xf32>, vector<8x32xf32>, vector<8x32xf32> -> vector<8x32xf32>
    %280 = arith.addf %276, %279 : vector<8x32xf32>
    %281 = tpu.concatenate %172, %280 in 0 : vector<8x32xf32>, vector<8x32xf32> -> vector<16x32xf32>
    %c3_169 = arith.constant 3 : index
    %c0_170 = arith.constant 0 : index
    %282 = vector.load %arg7[%c3_169, %c0_170] : memref<10x64xf32, #tpu.memory_space<vmem>>, vector<1x32xf32>
    %283 = vector.broadcast %282 : vector<1x32xf32> to vector<16x32xf32>
    %284 = arith.addf %281, %283 : vector<16x32xf32>
    %285 = arith.addf %284, %1 : vector<16x32xf32>
    %cst_171 = arith.constant dense<0.000000e+00> : vector<16xf32>
    %286 = vector.multi_reduction <add>, %285, %cst_171 [1] : vector<16x32xf32> to vector<16xf32>
    %287 = vector.shape_cast %286 : vector<16xf32> to vector<16x1xf32>
    %cst_172 = arith.constant 3.200000e+01 : f32
    %288 = vector.broadcast %cst_172 : f32 to vector<16x1xf32>
    %289 = arith.divf %287, %288 : vector<16x1xf32>
    %290 = vector.broadcast %289 : vector<16x1xf32> to vector<16x32xf32>
    %291 = arith.subf %285, %290 : vector<16x32xf32>
    %292 = arith.mulf %291, %291 : vector<16x32xf32>
    %cst_173 = arith.constant dense<0.000000e+00> : vector<16xf32>
    %293 = vector.multi_reduction <add>, %292, %cst_173 [1] : vector<16x32xf32> to vector<16xf32>
    %294 = vector.shape_cast %293 : vector<16xf32> to vector<16x1xf32>
    %cst_174 = arith.constant 3.200000e+01 : f32
    %295 = vector.broadcast %cst_174 : f32 to vector<16x1xf32>
    %296 = arith.divf %294, %295 : vector<16x1xf32>
    %297 = vector.broadcast %289 : vector<16x1xf32> to vector<16x32xf32>
    %298 = arith.subf %285, %297 : vector<16x32xf32>
    %cst_175 = arith.constant 9.99999974E-6 : f32
    %299 = vector.broadcast %cst_175 : f32 to vector<16x1xf32>
    %300 = arith.addf %296, %299 : vector<16x1xf32>
    %301 = math.rsqrt %300 : vector<16x1xf32>
    %302 = vector.broadcast %301 : vector<16x1xf32> to vector<16x32xf32>
    %303 = arith.mulf %298, %302 : vector<16x32xf32>
    %c4 = arith.constant 4 : index
    %c0_176 = arith.constant 0 : index
    %304 = vector.load %arg7[%c4, %c0_176] : memref<10x64xf32, #tpu.memory_space<vmem>>, vector<1x32xf32>
    %305 = vector.broadcast %304 : vector<1x32xf32> to vector<16x32xf32>
    %306 = arith.mulf %303, %305 : vector<16x32xf32>
    %c5 = arith.constant 5 : index
    %c0_177 = arith.constant 0 : index
    %307 = vector.load %arg7[%c5, %c0_177] : memref<10x64xf32, #tpu.memory_space<vmem>>, vector<1x32xf32>
    %308 = vector.broadcast %307 : vector<1x32xf32> to vector<16x32xf32>
    %309 = arith.addf %306, %308 : vector<16x32xf32>
    %c0_178 = arith.constant 0 : index
    %c0_179 = arith.constant 0 : index
    %310 = vector.load %arg5[%c0_178, %c0_179] : memref<32x64xf32, #tpu.memory_space<vmem>>, vector<32x64xf32>
    %cst_180 = arith.constant dense<0.000000e+00> : vector<16x64xf32>
    %311 = tpu.matmul %309, %310, %cst_180 {dimension_numbers = #tpu.dot_dimension_numbers<[1], [0], [0], [1], [0, 0, 1, 1], [], []>} : vector<16x32xf32>, vector<32x64xf32>, vector<16x64xf32> -> vector<16x64xf32>
    %c6 = arith.constant 6 : index
    %c0_181 = arith.constant 0 : index
    %312 = vector.load %arg7[%c6, %c0_181] : memref<10x64xf32, #tpu.memory_space<vmem>>, vector<1x64xf32>
    %313 = vector.broadcast %312 : vector<1x64xf32> to vector<16x64xf32>
    %314 = arith.addf %311, %313 : vector<16x64xf32>
    %cst_182 = arith.constant 0.000000e+00 : f32
    %315 = vector.broadcast %cst_182 : f32 to vector<16x64xf32>
    %316 = arith.maximumf %314, %315 : vector<16x64xf32>
    %c0_183 = arith.constant 0 : index
    %c0_184 = arith.constant 0 : index
    %317 = vector.load %arg6[%c0_183, %c0_184] : memref<64x32xf32, #tpu.memory_space<vmem>>, vector<64x32xf32>
    %cst_185 = arith.constant dense<0.000000e+00> : vector<16x32xf32>
    %318 = tpu.matmul %316, %317, %cst_185 {dimension_numbers = #tpu.dot_dimension_numbers<[1], [0], [0], [1], [0, 0, 1, 1], [], []>} : vector<16x64xf32>, vector<64x32xf32>, vector<16x32xf32> -> vector<16x32xf32>
    %c7 = arith.constant 7 : index
    %c0_186 = arith.constant 0 : index
    %319 = vector.load %arg7[%c7, %c0_186] : memref<10x64xf32, #tpu.memory_space<vmem>>, vector<1x32xf32>
    %320 = vector.broadcast %319 : vector<1x32xf32> to vector<16x32xf32>
    %321 = arith.addf %318, %320 : vector<16x32xf32>
    %322 = arith.addf %321, %309 : vector<16x32xf32>
    %cst_187 = arith.constant dense<0.000000e+00> : vector<16xf32>
    %323 = vector.multi_reduction <add>, %322, %cst_187 [1] : vector<16x32xf32> to vector<16xf32>
    %324 = vector.shape_cast %323 : vector<16xf32> to vector<16x1xf32>
    %cst_188 = arith.constant 3.200000e+01 : f32
    %325 = vector.broadcast %cst_188 : f32 to vector<16x1xf32>
    %326 = arith.divf %324, %325 : vector<16x1xf32>
    %327 = vector.broadcast %326 : vector<16x1xf32> to vector<16x32xf32>
    %328 = arith.subf %322, %327 : vector<16x32xf32>
    %329 = arith.mulf %328, %328 : vector<16x32xf32>
    %cst_189 = arith.constant dense<0.000000e+00> : vector<16xf32>
    %330 = vector.multi_reduction <add>, %329, %cst_189 [1] : vector<16x32xf32> to vector<16xf32>
    %331 = vector.shape_cast %330 : vector<16xf32> to vector<16x1xf32>
    %cst_190 = arith.constant 3.200000e+01 : f32
    %332 = vector.broadcast %cst_190 : f32 to vector<16x1xf32>
    %333 = arith.divf %331, %332 : vector<16x1xf32>
    %334 = vector.broadcast %326 : vector<16x1xf32> to vector<16x32xf32>
    %335 = arith.subf %322, %334 : vector<16x32xf32>
    %cst_191 = arith.constant 9.99999974E-6 : f32
    %336 = vector.broadcast %cst_191 : f32 to vector<16x1xf32>
    %337 = arith.addf %333, %336 : vector<16x1xf32>
    %338 = math.rsqrt %337 : vector<16x1xf32>
    %339 = vector.broadcast %338 : vector<16x1xf32> to vector<16x32xf32>
    %340 = arith.mulf %335, %339 : vector<16x32xf32>
    %c8_192 = arith.constant 8 : index
    %c0_193 = arith.constant 0 : index
    %341 = vector.load %arg7[%c8_192, %c0_193] : memref<10x64xf32, #tpu.memory_space<vmem>>, vector<1x32xf32>
    %342 = vector.broadcast %341 : vector<1x32xf32> to vector<16x32xf32>
    %343 = arith.mulf %340, %342 : vector<16x32xf32>
    %c9 = arith.constant 9 : index
    %c0_194 = arith.constant 0 : index
    %344 = vector.load %arg7[%c9, %c0_194] : memref<10x64xf32, #tpu.memory_space<vmem>>, vector<1x32xf32>
    %345 = vector.broadcast %344 : vector<1x32xf32> to vector<16x32xf32>
    %346 = arith.addf %343, %345 : vector<16x32xf32>
    %347 = vector.extract_strided_slice %346 {offsets = [0, 0], sizes = [8, 32], strides = [1, 1]} : vector<16x32xf32> to vector<8x32xf32>
    %348 = vector.extract_strided_slice %347 {offsets = [0, 0], sizes = [1, 32], strides = [1, 1]} : vector<8x32xf32> to vector<1x32xf32>
    %349 = vector.extract_strided_slice %347 {offsets = [1, 0], sizes = [1, 32], strides = [1, 1]} : vector<8x32xf32> to vector<1x32xf32>
    %350 = vector.extract_strided_slice %347 {offsets = [2, 0], sizes = [1, 32], strides = [1, 1]} : vector<8x32xf32> to vector<1x32xf32>
    %351 = vector.extract_strided_slice %347 {offsets = [3, 0], sizes = [1, 32], strides = [1, 1]} : vector<8x32xf32> to vector<1x32xf32>
    %352 = vector.extract_strided_slice %347 {offsets = [4, 0], sizes = [1, 32], strides = [1, 1]} : vector<8x32xf32> to vector<1x32xf32>
    %353 = vector.extract_strided_slice %347 {offsets = [5, 0], sizes = [1, 32], strides = [1, 1]} : vector<8x32xf32> to vector<1x32xf32>
    %354 = vector.extract_strided_slice %347 {offsets = [6, 0], sizes = [1, 32], strides = [1, 1]} : vector<8x32xf32> to vector<1x32xf32>
    %355 = vector.extract_strided_slice %347 {offsets = [7, 0], sizes = [1, 32], strides = [1, 1]} : vector<8x32xf32> to vector<1x32xf32>
    %356 = tpu.concatenate %348, %349, %350, %351, %352, %353, %354, %355 in 1 : vector<1x32xf32>, vector<1x32xf32>, vector<1x32xf32>, vector<1x32xf32>, vector<1x32xf32>, vector<1x32xf32>, vector<1x32xf32>, vector<1x32xf32> -> vector<1x256xf32>
    %c0_195 = arith.constant 0 : index
    %c0_196 = arith.constant 0 : index
    %c0_197 = arith.constant 0 : index
    %357 = vector.load %arg8[%c0_195, %c0_196, %c0_197] : memref<2x1x256xf32, #tpu.memory_space<vmem>>, vector<1x1x256xf32>
    %358 = vector.shape_cast %357 : vector<1x1x256xf32> to vector<1x256xf32>
    %359 = vector.shape_cast %356 : vector<1x256xf32> to vector<1x1x256xf32>
    tpu.vector_store %arg8[%c0_195, %c0_196, %c0_197], %359 {strides = array<i32>} : memref<2x1x256xf32, #tpu.memory_space<vmem>>, vector<1x1x256xf32>,
    %360 = vector.extract_strided_slice %346 {offsets = [8, 0], sizes = [8, 32], strides = [1, 1]} : vector<16x32xf32> to vector<8x32xf32>
    %361 = vector.extract_strided_slice %360 {offsets = [0, 0], sizes = [1, 32], strides = [1, 1]} : vector<8x32xf32> to vector<1x32xf32>
    %362 = vector.extract_strided_slice %360 {offsets = [1, 0], sizes = [1, 32], strides = [1, 1]} : vector<8x32xf32> to vector<1x32xf32>
    %363 = vector.extract_strided_slice %360 {offsets = [2, 0], sizes = [1, 32], strides = [1, 1]} : vector<8x32xf32> to vector<1x32xf32>
    %364 = vector.extract_strided_slice %360 {offsets = [3, 0], sizes = [1, 32], strides = [1, 1]} : vector<8x32xf32> to vector<1x32xf32>
    %365 = vector.extract_strided_slice %360 {offsets = [4, 0], sizes = [1, 32], strides = [1, 1]} : vector<8x32xf32> to vector<1x32xf32>
    %366 = vector.extract_strided_slice %360 {offsets = [5, 0], sizes = [1, 32], strides = [1, 1]} : vector<8x32xf32> to vector<1x32xf32>
    %367 = vector.extract_strided_slice %360 {offsets = [6, 0], sizes = [1, 32], strides = [1, 1]} : vector<8x32xf32> to vector<1x32xf32>
    %368 = vector.extract_strided_slice %360 {offsets = [7, 0], sizes = [1, 32], strides = [1, 1]} : vector<8x32xf32> to vector<1x32xf32>
    %369 = tpu.concatenate %361, %362, %363, %364, %365, %366, %367, %368 in 1 : vector<1x32xf32>, vector<1x32xf32>, vector<1x32xf32>, vector<1x32xf32>, vector<1x32xf32>, vector<1x32xf32>, vector<1x32xf32>, vector<1x32xf32> -> vector<1x256xf32>
    %c1_198 = arith.constant 1 : index
    %c0_199 = arith.constant 0 : index
    %c0_200 = arith.constant 0 : index
    %370 = vector.load %arg8[%c1_198, %c0_199, %c0_200] : memref<2x1x256xf32, #tpu.memory_space<vmem>>, vector<1x1x256xf32>
    %371 = vector.shape_cast %370 : vector<1x1x256xf32> to vector<1x256xf32>
    %372 = vector.shape_cast %369 : vector<1x256xf32> to vector<1x1x256xf32>
    tpu.vector_store %arg8[%c1_198, %c0_199, %c0_200], %372 {strides = array<i32>} : memref<2x1x256xf32, #tpu.memory_space<vmem>>, vector<1x1x256xf32>,
    return
  }
  func.func @transform_0(%arg0: i32) -> (i32, i32, i32) {
    %c0_i32 = arith.constant 0 : i32
    %c0_i32_0 = arith.constant 0 : i32
    %c0_i32_1 = arith.constant 0 : i32
    return %arg0, %c0_i32, %c0_i32_0 : i32, i32, i32
  }
  func.func @transform_1(%arg0: i32) -> (i32, i32, i32) {
    %c0_i32 = arith.constant 0 : i32
    %c0_i32_0 = arith.constant 0 : i32
    %c0_i32_1 = arith.constant 0 : i32
    return %arg0, %c0_i32, %c0_i32_0 : i32, i32, i32
  }
  func.func @transform_2(%arg0: i32) -> (i32, i32) {
    %c0_i32 = arith.constant 0 : i32
    %c0_i32_0 = arith.constant 0 : i32
    %c0_i32_1 = arith.constant 0 : i32
    return %c0_i32, %c0_i32_0 : i32, i32
  }
  func.func @transform_3(%arg0: i32) -> (i32, i32) {
    %c0_i32 = arith.constant 0 : i32
    %c0_i32_0 = arith.constant 0 : i32
    %c0_i32_1 = arith.constant 0 : i32
    return %c0_i32, %c0_i32_0 : i32, i32
  }
  func.func @transform_4(%arg0: i32) -> (i32, i32) {
    %c0_i32 = arith.constant 0 : i32
    %c0_i32_0 = arith.constant 0 : i32
    %c0_i32_1 = arith.constant 0 : i32
    return %c0_i32, %c0_i32_0 : i32, i32
  }
  func.func @transform_5(%arg0: i32) -> (i32, i32) {
    %c0_i32 = arith.constant 0 : i32
    %c0_i32_0 = arith.constant 0 : i32
    %c0_i32_1 = arith.constant 0 : i32
    return %c0_i32, %c0_i32_0 : i32, i32
  }
  func.func @transform_6(%arg0: i32) -> (i32, i32) {
    %c0_i32 = arith.constant 0 : i32
    %c0_i32_0 = arith.constant 0 : i32
    %c0_i32_1 = arith.constant 0 : i32
    return %c0_i32, %c0_i32_0 : i32, i32
  }
  func.func @transform_7(%arg0: i32) -> (i32, i32, i32) {
    %c0_i32 = arith.constant 0 : i32
    %c0_i32_0 = arith.constant 0 : i32
    %c0_i32_1 = arith.constant 0 : i32
    return %arg0, %c0_i32, %c0_i32_0 : i32, i32, i32
  }
}

</mosaic_0001>

<bundles_post_ra>
// kernel: decoder_layer_forward.1
= control target key start
LH: loop header
LB: loop body
LE: loop exit
PB: predicated region body
PF: predicated region fallthrough
CT: control target
= control target key end

     0   :  { %vm37_vm0 = vcmask 261120   ;;  %s4155_s26 = smov 96   ;;  %s4156_s27 = smov 64   ;;  %v4166_v48 = vmov 0.0   ;;  %vm1126_vm1 = vcmask 7168   ;;  %vm4167_vm2 = vmmov 0   ;;  %s4796_s2 = inlined_call_operand.vmem [shape: f32[32,96], index: 2, kind: input, shape index: {}]   ;;  %s4797_s0 = inlined_call_operand.vmem [shape: f32[2,8,32], index: 0, kind: input, shape index: {}]   ;;  %s4798_s6 = inlined_call_operand.vmem [shape: f32[10,64], index: 6, kind: input, shape index: {}]   ;;  %s4799_s1 = inlined_call_operand.vmem [shape: f32[2,8,1], index: 1, kind: input, shape index: {}]   ;;  %s4800_s3 = inlined_call_operand.vmem [shape: f32[32,32], index: 3, kind: input, shape index: {}]   ;;  %s4801_s4 = inlined_call_operand.vmem [shape: f32[32,64], index: 4, kind: input, shape index: {}]   ;;  %s4802_s5 = inlined_call_operand.vmem [shape: f32[64,32], index: 5, kind: input, shape index: {}]   ;;  %s4803_s7 = inlined_call_operand.vmem [shape: f32[2,1,256], index: 7, kind: output, shape index: {}]  }
   0x1   :  { %v4213_v0 = vld [vmem:[%s4796_s2 + $0x18] sm:$0xff]  ;;  %v4222_v1 = vld [vmem:[%s4797_s0] sm:$0xff]  ;;  %v4227_v2 = vld [vmem:[%s4796_s2 + $0x10] sm:$0xff]  ;;  %s4158_s15 = smov 120   ;;  %s4159_s16 = smov 112   ;;  %vm1201_vm3 = vcmask 64512  }
   0x2   :  { %134 = vrot.lane.b32.xlu1 %v4213_v0, %s4155_s26  ;;  %226 = vrot.lane.b32.xlu0 %v4213_v0, %s4156_s27  ;;  %v4232_v3 = vld [vmem:[%s4796_s2 + $0x8] sm:$0xff]  ;;  %v28_v4 = vld [vmem:[%s4796_s2] sm:$0xff]  ;;  %s4157_s2 = smov 88   ;;  %s4160_s17 = smov 56   ;;  %vm3352_vm7 = vcmask 523264   ;;  %vm3505_vm8 = vcmask 785408  }
   0x3   :  { %3806 = vmatprep.subr.mxu0 %v4213_v0  ;;  %3814 = vmatprep.mubr.msk.f32.mxu0 %vm37_vm0, %v4222_v1  ;;  %v4257_v5 = vld [vmem:[%s4797_s0 + $0x8] sm:$0xff]  ;;  %s4161_s18 = smov 48   ;;  %s4162_s19 = smov 80   ;;  %v4308_v6 = vld [vmem:[%s4798_s6 + $0x1] ss:$0 sm:$0xff] }
   0x4   :  { %3807 = vmatpush3.msra.mxu0 %v4213_v0  ;;  %3825 = vmatprep.mubr.msk.f32.mxu1 %vm37_vm0, %v4222_v1  ;;  %s4163_s20 = smov 72   ;;  %s4164_s21 = smov 104   ;;  %v4313_v7 = vld [vmem:[%s4798_s6] ss:$0 sm:$0xff]  ;;  %v4390_v59 = vld [vmem:[%s4798_s6 + $0x2] ss:$0 sm:$0xff] }
   0x5   :  { %3808 = vmatprep.subr.mxu0 %v4227_v2  ;;  %s4165_s22 = smov 40   ;;  %v1125_v49 = vld [vmem:[%s4799_s1] sm:$0xff]  ;;  %s4168_s10 = smov 32  }
   0x6   :  { %224 = vrot.lane.b32.xlu0 %v4227_v2, %s4156_s27  ;;  %222 = vrot.lane.b32.xlu1 %v4232_v3, %s4156_s27 }
   0x7   :  { %3809 = vmatpush3.msra.mxu0 %v4227_v2 }
   0x8   :  { %3810 = vmatprep.subr.mxu0 %v4232_v3 }
   0x9   :  { %3811 = vmatpush3.msra.mxu0 %v4232_v3 }
   0xa   :  { %132 = vrot.lane.b32.xlu0 %v4227_v2, %s4155_s26  ;;  %220 = vrot.lane.b32.xlu1 %v28_v4, %s4156_s27 }
   0xb   :  { %3812 = vmatprep.subr.mxu0 %v28_v4 }
   0xc   :  { %3813 = vmatpush3.msra.mxu0 %v28_v4 }
   0xd   :  { %3815 = vmatmul.mubr.msk.f32.vlgmr.msra.gmra.mxu0 %vm37_vm0, %v4257_v5 }
   0xe   :  { %130 = vrot.lane.b32.xlu0 %v4232_v3, %s4155_s26  ;;  %404 = vrot.lane.b32.xlu1 %v4213_v0, %s4157_s2 }
   0xf   :  { %3836 = vmatprep.mubr.msk.f32.mxu0 %vm37_vm0, %v4222_v1 }
  0x12   :  { %128 = vrot.lane.b32.xlu0 %v28_v4, %s4155_s26  ;;  %402 = vrot.lane.b32.xlu1 %v4227_v2, %s4157_s2 }
  0x16   :  { %313 = vrot.lane.b32.xlu0 %v4213_v0, %s4158_s15  ;;  %400 = vrot.lane.b32.xlu1 %v4232_v3, %s4157_s2 }
  0x1a   :  { %311 = vrot.lane.b32.xlu0 %v4227_v2, %s4158_s15  ;;  %398 = vrot.lane.b32.xlu1 %v28_v4, %s4157_s2 }
  0x1e   :  { %309 = vrot.lane.b32.xlu0 %v4232_v3, %s4158_s15  ;;  %586 = vrot.lane.b32.xlu1 %v4213_v0, %s4159_s16 }
  0x22   :  { %307 = vrot.lane.b32.xlu0 %v28_v4, %s4158_s15  ;;  %584 = vrot.lane.b32.xlu1 %v4227_v2, %s4159_s16 }
  0x26   :  { %495 = vrot.lane.b32.xlu0 %v4213_v0, %s4160_s17  ;;  %582 = vrot.lane.b32.xlu1 %v4232_v3, %s4159_s16 }
  0x2a   :  { %493 = vrot.lane.b32.xlu0 %v4227_v2, %s4160_s17  ;;  %580 = vrot.lane.b32.xlu1 %v28_v4, %s4159_s16 }
  0x2e   :  { %491 = vrot.lane.b32.xlu0 %v4232_v3, %s4160_s17  ;;  %766 = vrot.lane.b32.xlu1 %v4213_v0, %s4161_s18 }
  0x32   :  { %489 = vrot.lane.b32.xlu0 %v28_v4, %s4160_s17  ;;  %764 = vrot.lane.b32.xlu1 %v4227_v2, %s4161_s18 }
  0x36   :  { %676 = vrot.lane.b32.xlu0 %v4213_v0, %s4162_s19  ;;  %762 = vrot.lane.b32.xlu1 %v4232_v3, %s4161_s18 }
  0x3a   :  { %674 = vrot.lane.b32.xlu0 %v4227_v2, %s4162_s19  ;;  %760 = vrot.lane.b32.xlu1 %v28_v4, %s4161_s18 }
  0x3e   :  { %672 = vrot.lane.b32.xlu0 %v4232_v3, %s4162_s19  ;;  %946 = vrot.lane.b32.xlu1 %v4213_v0, %s4163_s20 }
  0x42   :  { %670 = vrot.lane.b32.xlu0 %v28_v4, %s4162_s19  ;;  %944 = vrot.lane.b32.xlu1 %v4227_v2, %s4163_s20 }
  0x46   :  { %856 = vrot.lane.b32.xlu0 %v4213_v0, %s4164_s21  ;;  %942 = vrot.lane.b32.xlu1 %v4232_v3, %s4163_s20 }
  0x4a   :  { %854 = vrot.lane.b32.xlu0 %v4227_v2, %s4164_s21  ;;  %940 = vrot.lane.b32.xlu1 %v28_v4, %s4163_s20 }
  0x4e   :  { %852 = vrot.lane.b32.xlu0 %v4232_v3, %s4164_s21  ;;  %850 = vrot.lane.b32.xlu1 %v28_v4, %s4164_s21 }
  0x52   :  { %1036 = vrot.lane.b32.xlu0 %v4213_v0, %s4165_s22  ;;  %1034 = vrot.lane.b32.xlu1 %v4227_v2, %s4165_s22 }
  0x56   :  { %1032 = vrot.lane.b32.xlu0 %v4232_v3, %s4165_s22  ;;  %1030 = vrot.lane.b32.xlu1 %v28_v4, %s4165_s22 }
  0x5a   :  { %411 = vrot.lane.b32.xlu0 %v4308_v6, %s4158_s15  ;;  %320 = vrot.lane.b32.xlu1 %v4313_v7, %s4158_s15 }
  0x5e   :  { %592 = vrot.lane.b32.xlu1 %v4313_v7, %s4159_s16  ;;  %682 = vrot.lane.b32.xlu0 %v4308_v6, %s4159_s16 }
  0x62   :  { %952 = vrot.lane.b32.xlu0 %v4308_v6, %s4164_s21  ;;  %862 = vrot.lane.b32.xlu1 %v4313_v7, %s4164_s21 }
  0x74   :  { %v135_v8 = vpop.permute.xlu1 %134  ;;  %v227_v9 = vpop.permute.xlu0 %226 }
  0x75   :  { %3828 = vmatprep.subr.mxu0 %v227_v9  ;;  %3817 = vmatprep.subr.mxu1 %v135_v8 }
  0x76   :  { %3829 = vmatpush3.msra.mxu0 %v227_v9  ;;  %3818 = vmatpush3.msra.mxu1 %v135_v8 }
  0x78   :  { %v225_v10 = vpop.permute.xlu0 %224  ;;  %v223_v11 = vpop.permute.xlu1 %222 }
  0x79   :  { %3830 = vmatprep.subr.mxu0 %v225_v10 }
  0x7a   :  { %3831 = vmatpush3.msra.mxu0 %v225_v10 }
  0x7b   :  { %3832 = vmatprep.subr.mxu0 %v223_v11 }
  0x7c   :  { %v133_v12 = vpop.permute.xlu0 %132  ;;  %v221_v13 = vpop.permute.xlu1 %220  ;;  %3833 = vmatpush3.msra.mxu0 %v223_v11 }
  0x7d   :  { %3819 = vmatprep.subr.mxu1 %v133_v12  ;;  %3834 = vmatprep.subr.mxu0 %v221_v13 }
  0x7e   :  { %3820 = vmatpush3.msra.mxu1 %v133_v12  ;;  %3835 = vmatpush3.msra.mxu0 %v221_v13 }
  0x7f   :  { %3837 = vmatmul.mubr.msk.f32.vlgmr.msra.gmra.mxu0 %vm37_vm0, %v4257_v5 }
  0x80   :  { %v131_v14 = vpop.permute.xlu0 %130  ;;  %v405_v15 = vpop.permute.xlu1 %404  ;;  %3858 = vmatprep.mubr.msk.f32.mxu0 %vm37_vm0, %v4222_v1 }
  0x81   :  { %3821 = vmatprep.subr.mxu1 %v131_v14  ;;  %3850 = vmatprep.subr.mxu0 %v405_v15 }
  0x82   :  { %3822 = vmatpush3.msra.mxu1 %v131_v14  ;;  %3851 = vmatpush3.msra.mxu0 %v405_v15 }
  0x84   :  { %v129_v16 = vpop.permute.xlu0 %128  ;;  %v403_v17 = vpop.permute.xlu1 %402 }
  0x85   :  { %3823 = vmatprep.subr.mxu1 %v129_v16  ;;  %3852 = vmatprep.subr.mxu0 %v403_v17 }
  0x86   :  { %3824 = vmatpush3.msra.mxu1 %v129_v16  ;;  %3853 = vmatpush3.msra.mxu0 %v403_v17 }
  0x87   :  { %3826 = vmatmul.mubr.msk.f32.vlgmr.msra.gmra.mxu1 %vm37_vm0, %v4257_v5 }
  0x88   :  { %v314_v18 = vpop.permute.xlu0 %313  ;;  %v401_v19 = vpop.permute.xlu1 %400  ;;  %3847 = vmatprep.mubr.msk.f32.mxu1 %vm37_vm0, %v4222_v1 }
  0x89   :  { %3839 = vmatprep.subr.mxu1 %v314_v18  ;;  %3854 = vmatprep.subr.mxu0 %v401_v19 }
  0x8a   :  { %3840 = vmatpush3.msra.mxu1 %v314_v18  ;;  %3855 = vmatpush3.msra.mxu0 %v401_v19 }
  0x8c   :  { %v312_v20 = vpop.permute.xlu0 %311  ;;  %v399_v21 = vpop.permute.xlu1 %398 }
  0x8d   :  { %3841 = vmatprep.subr.mxu1 %v312_v20  ;;  %3856 = vmatprep.subr.mxu0 %v399_v21 }
  0x8e   :  { %3842 = vmatpush3.msra.mxu1 %v312_v20  ;;  %3857 = vmatpush3.msra.mxu0 %v399_v21 }
  0x8f   :  { %3859 = vmatmul.mubr.msk.f32.vlgmr.msra.gmra.mxu0 %vm37_vm0, %v4257_v5 }
  0x90   :  { %v310_v22 = vpop.permute.xlu0 %309  ;;  %v587_v23 = vpop.permute.xlu1 %586  ;;  %3880 = vmatprep.mubr.msk.f32.mxu0 %vm37_vm0, %v4222_v1 }
  0x91   :  { %3843 = vmatprep.subr.mxu1 %v310_v22  ;;  %3872 = vmatprep.subr.mxu0 %v587_v23 }
  0x92   :  { %3844 = vmatpush3.msra.mxu1 %v310_v22  ;;  %3873 = vmatpush3.msra.mxu0 %v587_v23 }
  0x94   :  { %v308_v24 = vpop.permute.xlu0 %307  ;;  %v585_v25 = vpop.permute.xlu1 %584 }
  0x95   :  { %3845 = vmatprep.subr.mxu1 %v308_v24  ;;  %3874 = vmatprep.subr.mxu0 %v585_v25 }
  0x96   :  { %3846 = vmatpush3.msra.mxu1 %v308_v24  ;;  %3875 = vmatpush3.msra.mxu0 %v585_v25 }
  0x97   :  { %3848 = vmatmul.mubr.msk.f32.vlgmr.msra.gmra.mxu1 %vm37_vm0, %v4257_v5 }
  0x98   :  { %v496_v26 = vpop.permute.xlu0 %495  ;;  %v583_v27 = vpop.permute.xlu1 %582  ;;  %3869 = vmatprep.mubr.msk.f32.mxu1 %vm37_vm0, %v4222_v1 }
  0x99   :  { %3861 = vmatprep.subr.mxu1 %v496_v26  ;;  %3876 = vmatprep.subr.mxu0 %v583_v27 }
  0x9a   :  { %3862 = vmatpush3.msra.mxu1 %v496_v26  ;;  %3877 = vmatpush3.msra.mxu0 %v583_v27 }
  0x9c   :  { %v494_v28 = vpop.permute.xlu0 %493  ;;  %v581_v29 = vpop.permute.xlu1 %580 }
  0x9d   :  { %3863 = vmatprep.subr.mxu1 %v494_v28  ;;  %3878 = vmatprep.subr.mxu0 %v581_v29 }
  0x9e   :  { %3864 = vmatpush3.msra.mxu1 %v494_v28  ;;  %3879 = vmatpush3.msra.mxu0 %v581_v29 }
  0x9f   :  { %3881 = vmatmul.mubr.msk.f32.vlgmr.msra.gmra.mxu0 %vm37_vm0, %v4257_v5 }
  0xa0   :  { %v492_v30 = vpop.permute.xlu0 %491  ;;  %v767_v31 = vpop.permute.xlu1 %766  ;;  %3902 = vmatprep.mubr.msk.f32.mxu0 %vm37_vm0, %v4222_v1 }
  0xa1   :  { %3865 = vmatprep.subr.mxu1 %v492_v30  ;;  %3894 = vmatprep.subr.mxu0 %v767_v31 }
  0xa2   :  { %3866 = vmatpush3.msra.mxu1 %v492_v30  ;;  %3895 = vmatpush3.msra.mxu0 %v767_v31 }
  0xa4   :  { %v490_v32 = vpop.permute.xlu0 %489  ;;  %v765_v33 = vpop.permute.xlu1 %764 }
  0xa5   :  { %3867 = vmatprep.subr.mxu1 %v490_v32  ;;  %3896 = vmatprep.subr.mxu0 %v765_v33 }
  0xa6   :  { %3868 = vmatpush3.msra.mxu1 %v490_v32  ;;  %3897 = vmatpush3.msra.mxu0 %v765_v33  ;;  %v1120_v32 = vlaneseq }
  0xa7   :  { %3870 = vmatmul.mubr.msk.f32.vlgmr.msra.gmra.mxu1 %vm37_vm0, %v4257_v5 }
  0xa8   :  { %v677_v34 = vpop.permute.xlu0 %676  ;;  %v763_v35 = vpop.permute.xlu1 %762  ;;  %3891 = vmatprep.mubr.msk.f32.mxu1 %vm37_vm0, %v4222_v1  ;;  %v4457_v33 = vshrl.u32 %v1120_v32, 7  ;;  %vm3530_vm9 = vcmp.lt.s32.totalorder %v1120_v32, 256 }
  0xa9   :  { %3883 = vmatprep.subr.mxu1 %v677_v34  ;;  %3898 = vmatprep.subr.mxu0 %v763_v35 }
  0xaa   :  { %3884 = vmatpush3.msra.mxu1 %v677_v34  ;;  %3899 = vmatpush3.msra.mxu0 %v763_v35  ;;  %v1123_v34 = vand.u32 127, %v1120_v32 }
  0xac   :  { %v675_v36 = vpop.permute.xlu0 %674  ;;  %v761_v37 = vpop.permute.xlu1 %760  ;;  %vm4461_vm4 = vcmp.gt.s32.totalorder %v1123_v34, %v4457_v33 }
  0xad   :  { %3885 = vmatprep.subr.mxu1 %v675_v36  ;;  %3900 = vmatprep.subr.mxu0 %v761_v37 }
  0xae   :  { %3886 = vmatpush3.msra.mxu1 %v675_v36  ;;  %3901 = vmatpush3.msra.mxu0 %v761_v37 }
  0xaf   :  { %3903 = vmatmul.mubr.msk.f32.vlgmr.msra.gmra.mxu0 %vm37_vm0, %v4257_v5 }
  0xb0   :  { %v673_v38 = vpop.permute.xlu0 %672  ;;  %v947_v39 = vpop.permute.xlu1 %946  ;;  %3924 = vmatprep.mubr.msk.f32.mxu0 %vm37_vm0, %v4222_v1 }
  0xb1   :  { %3887 = vmatprep.subr.mxu1 %v673_v38  ;;  %3916 = vmatprep.subr.mxu0 %v947_v39 }
  0xb2   :  { %3888 = vmatpush3.msra.mxu1 %v673_v38  ;;  %3917 = vmatpush3.msra.mxu0 %v947_v39 }
  0xb4   :  { %v671_v40 = vpop.permute.xlu0 %670  ;;  %v945_v41 = vpop.permute.xlu1 %944 }
  0xb5   :  { %3889 = vmatprep.subr.mxu1 %v671_v40  ;;  %3918 = vmatprep.subr.mxu0 %v945_v41 }
  0xb6   :  { %3890 = vmatpush3.msra.mxu1 %v671_v40  ;;  %3919 = vmatpush3.msra.mxu0 %v945_v41 }
  0xb7   :  { %3892 = vmatmul.mubr.msk.f32.vlgmr.msra.gmra.mxu1 %vm37_vm0, %v4257_v5 }
  0xb8   :  { %v857_v42 = vpop.permute.xlu0 %856  ;;  %v943_v43 = vpop.permute.xlu1 %942  ;;  %3913 = vmatprep.mubr.msk.f32.mxu1 %vm37_vm0, %v4222_v1 }
  0xb9   :  { %3905 = vmatprep.subr.mxu1 %v857_v42  ;;  %3920 = vmatprep.subr.mxu0 %v943_v43 }
  0xba   :  { %3906 = vmatpush3.msra.mxu1 %v857_v42  ;;  %3921 = vmatpush3.msra.mxu0 %v943_v43 }
  0xbc   :  { %v855_v44 = vpop.permute.xlu0 %854  ;;  %v941_v45 = vpop.permute.xlu1 %940 }
  0xbd   :  { %3907 = vmatprep.subr.mxu1 %v855_v44  ;;  %3922 = vmatprep.subr.mxu0 %v941_v45 }
  0xbe   :  { %3908 = vmatpush3.msra.mxu1 %v855_v44  ;;  %3923 = vmatpush3.msra.mxu0 %v941_v45 }
  0xbf   :  { %3925 = vmatmul.mubr.msk.f32.vlgmr.msra.gmra.mxu0 %vm37_vm0, %v4257_v5  ;;  %3938 = vmatprep.subr.mxu0 %v4166_v48 }
  0xc0   :  { %v853_v46 = vpop.permute.xlu0 %852  ;;  %v851_v47 = vpop.permute.xlu1 %850  ;;  %3939 = vmatpush3.xpose.msk.msra.mxu0 %vm1126_vm1, %v1125_v49  ;;  %3940 = vmatprep.mubr.msk.f32.mxu0 %vm4167_vm2, %v4166_v48 }
  0xc1   :  { %3909 = vmatprep.subr.mxu1 %v853_v46  ;;  %3943 = vmatprep.subr.mxu0 %v4166_v48 }
  0xc2   :  { %3910 = vmatpush3.msra.mxu1 %v853_v46 }
  0xc3   :  { %3911 = vmatprep.subr.mxu1 %v851_v47  ;;  %3941 = vmatmul.mubr.msk.f32.vlgmr.msra.gmra.mxu0 %vm1126_vm1, %v1125_v49 }
  0xc4   :  { %3912 = vmatpush3.msra.mxu1 %v851_v47  ;;  %v1037_v50 = vpop.permute.xlu0 %1036  ;;  %3945 = vmatprep.mubr.msk.f32.mxu0 %vm4167_vm2, %v4166_v48  ;;  %v1035_v51 = vpop.permute.xlu1 %1034 }
  0xc5   :  { %3914 = vmatmul.mubr.msk.f32.vlgmr.msra.gmra.mxu1 %vm37_vm0, %v4257_v5  ;;  %3927 = vmatprep.subr.mxu1 %v1037_v50 }
  0xc6   :  { %3935 = vmatprep.mubr.msk.f32.mxu1 %vm37_vm0, %v4222_v1  ;;  %3928 = vmatpush3.msra.mxu1 %v1037_v50 }
  0xc7   :  { %3929 = vmatprep.subr.mxu1 %v1035_v51 }
  0xc8   :  { %v1033_v52 = vpop.permute.xlu0 %1032  ;;  %3930 = vmatpush3.msra.mxu1 %v1035_v51  ;;  %v1031_v53 = vpop.permute.xlu1 %1030 }
  0xc9   :  { %3931 = vmatprep.subr.mxu1 %v1033_v52 }
  0xca   :  { %3932 = vmatpush3.msra.mxu1 %v1033_v52 }
  0xcb   :  { %3933 = vmatprep.subr.mxu1 %v1031_v53 }
  0xcc   :  { %3934 = vmatpush3.msra.mxu1 %v1031_v53  ;;  %v4400_v1 = vpop.permute.xlu0 %411 }
  0xcd   :  { %3936 = vmatmul.mubr.msk.f32.vlgmr.msra.gmra.mxu1 %vm37_vm0, %v4257_v5  ;;  %3953 = vmatprep.subr.mxu1 %v4166_v48  ;;  %v4381_v54 = vpop.f32.mrf.mxu0  ;;  %v4410_v5 = vpop.permute.xlu1 %320 }
  0xce   :  { %3955 = vmatprep.mubr.msk.f32.mxu1 %vm4167_vm2, %v4166_v48 }
  0xcf   :  { %v110_v55 = vpop.f32.mrf.mxu0 }
  0xd0   :  { %v111_v61 = vadd.f32 %v4313_v7, %v110_v55  ;;  %v4422_v13 = vpop.permute.xlu0 %682 }
  0xd1   :  { %v4428_v18 = vpop.permute.xlu1 %592 }
  0xd4   :  { %v4439_v23 = vpop.permute.xlu0 %952 }
  0xd5   :  { %v4448_v27 = vpop.permute.xlu1 %862 }
 0x13f   :  { %v4385_v57 = vpop.f32.mrf.mxu0 }
 0x141   :  { %v298_v62 = vpop.f32.mrf.mxu0 }
 0x142   :  { %v299_v63 = vadd.f32 %v4390_v59, %v298_v62 }
 0x147   :  { %v4383_v56 = vpop.f32.mrf.mxu1 }
 0x149   :  { %v206_v58 = vpop.f32.mrf.mxu1 }
 0x14a   :  { %v207_v60 = vadd.f32 %v4308_v6, %v206_v58 }
 0x14c   :  { %3944 = vmatpush3.xpose.msk.msra.mxu0 %vm1201_vm3, %v207_v60 }
 0x14d   :  { %3948 = vmatprep.subr.mxu0 %v4166_v48 }
 0x14f   :  { %3946 = vmatmul.mubr.msk.f32.vlgmr.msra.gmra.mxu0 %vm1201_vm3, %v111_v61  ;;  %v4398_v0 = vpop.f32.mrf.mxu0 }
 0x150   :  { %3949 = vmatpush3.msra.mxu0 %v299_v63  ;;  %3950 = vmatprep.mubr.msk.f32.mxu0 %vm4167_vm2, %v4166_v48 }
 0x151   :  { %v480_v2 = vpop.f32.mrf.mxu0  ;;  %3958 = vmatprep.subr.mxu0 %v4166_v48 }
 0x152   :  { %v481_v3 = vadd.f32 %v480_v2, %v4400_v1 }
 0x154   :  { %3954 = vmatpush3.xpose.msk.msra.mxu1 %vm1201_vm3, %v481_v3 }
 0x155   :  { %3963 = vmatprep.subr.mxu1 %v4166_v48 }
 0x157   :  { %v4408_v4 = vpop.f32.mrf.mxu1 }
 0x159   :  { %v389_v8 = vpop.f32.mrf.mxu1 }
 0x15a   :  { %v390_v9 = vadd.f32 %v389_v8, %v4410_v5 }
 0x15c   :  { %3956 = vmatmul.mubr.msk.f32.vlgmr.msra.gmra.mxu1 %vm1201_vm3, %v390_v9 }
 0x15d   :  { %3965 = vmatprep.mubr.msk.f32.mxu1 %vm4167_vm2, %v4166_v48 }
 0x15f   :  { %v4418_v11 = vpop.f32.mrf.mxu0 }
 0x161   :  { %v661_v14 = vpop.f32.mrf.mxu0 }
 0x162   :  { %v662_v20 = vadd.f32 %v661_v14, %v4428_v18 }
 0x167   :  { %v4416_v10 = vpop.f32.mrf.mxu1 }
 0x169   :  { %v4420_v12 = vpop.f32.mrf.mxu1 }
 0x16f   :  { %v4426_v16 = vpop.f32.mrf.mxu0 }
 0x171   :  { %v4433_v21 = vpop.f32.mrf.mxu0 }
 0x177   :  { %v4424_v15 = vpop.f32.mrf.mxu1 }
 0x179   :  { %v751_v17 = vpop.f32.mrf.mxu1 }
 0x17a   :  { %v752_v19 = vadd.f32 %v751_v17, %v4422_v13 }
 0x17c   :  { %3964 = vmatpush3.xpose.msk.msra.mxu1 %vm1201_vm3, %v752_v19 }
 0x17d   :  { %3973 = vmatprep.subr.mxu1 %v4166_v48 }
 0x17f   :  { %v4436_v22 = vpop.f32.mrf.mxu0  ;;  %3966 = vmatmul.mubr.msk.f32.vlgmr.msra.gmra.mxu1 %vm1201_vm3, %v662_v20 }
 0x180   :  { %3975 = vmatprep.mubr.msk.f32.mxu1 %vm4167_vm2, %v4166_v48 }
 0x181   :  { %v1021_v24 = vpop.f32.mrf.mxu0 }
 0x182   :  { %v1022_v25 = vadd.f32 %v1021_v24, %v4439_v23 }
 0x183   :  { %v4452_v30 = vpop.f32.mrf.mxu0 }
 0x184   :  { %3974 = vmatpush3.xpose.msk.msra.mxu1 %vm1201_vm3, %v1022_v25  ;;  %vm1200_vm5 = vcmp.eq.f32.partialorder %v4452_v30, 0.0 }
 0x185   :  { %v4445_v26 = vpop.f32.mrf.mxu1  ;;  %3983 = vmatprep.subr.mxu1 %v4166_v48  ;;  %v3942_v31 = vpop.f32.mrf.mxu0 }
 0x187   :  { %v931_v28 = vpop.f32.mrf.mxu1 }
 0x188   :  { %v932_v29 = vadd.f32 %v931_v28, %v4448_v27 }
 0x18a   :  { %3976 = vmatmul.mubr.msk.f32.vlgmr.msra.gmra.mxu1 %vm1201_vm3, %v932_v29 }
 0x18b   :  { %3985 = vmatprep.mubr.msk.f32.mxu1 %vm4167_vm2, %v4166_v48 }
 0x18d   :  { %v4468_v41 = vpop.f32.mrf.mxu1 }
 0x18f   :  { %v4470_v42 = vpop.f32.mrf.mxu1 }
 0x20f   :  { %v1274_v35 = vpop.f32.mrf.mxu0 }
 0x210   :  { %v1278_v37 = vmul.f32 0.35355338, %v1274_v35 }
 0x211   :  { %v3947_v38 = vpop.f32.mrf.mxu0 }
 0x212   :  { %v1279_v39 = vsel %vm4461_vm4, -1e+30, %v1278_v37 }
 0x213   :  { %v1280_v40 = vsel %vm1201_vm3, %v1279_v39, -inf }
 0x214   :  { %1281 = vmax.xlane.f32.xlu0 %v1280_v40 }
 0x21c   :  { %v1438_v43 = vpop.f32.mrf.mxu1 }
 0x21d   :  { %v1442_v44 = vmul.f32 0.35355338, %v1438_v43 }
 0x21e   :  { %v3957_v45 = vpop.f32.mrf.mxu1 }
 0x21f   :  { %v1443_v46 = vsel %vm4461_vm4, -1e+30, %v1442_v44 }
 0x220   :  { %v1444_v47 = vsel %vm1201_vm3, %v1443_v46, -inf }
 0x221   :  { %1445 = vmax.xlane.f32.xlu1 %v1444_v47 }
 0x232   :  { %502 = vrot.lane.b32.xlu1 %v4390_v59, %s4158_s15 }
 0x23f   :  { %v1602_v49 = vpop.f32.mrf.mxu1 }
 0x240   :  { %v1606_v50 = vmul.f32 0.35355338, %v1602_v49 }
 0x241   :  { %v3967_v51 = vpop.f32.mrf.mxu1 }
 0x242   :  { %v1607_v52 = vsel %vm4461_vm4, -1e+30, %v1606_v50 }
 0x243   :  { %v1608_v53 = vsel %vm1201_vm3, %v1607_v52, -inf }
 0x244   :  { %1609 = vmax.xlane.f32.xlu0 %v1608_v53 }
 0x24a   :  { %v1766_v55 = vpop.f32.mrf.mxu1 }
 0x24b   :  { %v1770_v58 = vmul.f32 0.35355338, %v1766_v55 }
 0x24c   :  { %v3977_v60 = vpop.f32.mrf.mxu1 }
 0x24d   :  { %v1771_v61 = vsel %vm4461_vm4, -1e+30, %v1770_v58 }
 0x24e   :  { %v1772_v62 = vsel %vm1201_vm3, %v1771_v61, -inf }
 0x24f   :  { %1773 = vmax.xlane.f32.xlu0 %v1772_v62 }
 0x29d   :  { %v1282_v63 = vpop.xlane.xlu0 %1281 }
 0x29e   :  { %v1283_v2 = vsub.f32 %v1279_v39, %v1282_v63 }
 0x2a0   :  { %v1284_v3 = vmul.f32 1.442695, %v1283_v2 }
 0x2a2   :  { %4113 = vpow2.f32 %v1284_v3 }
 0x2aa   :  { %v1446_v8 = vpop.xlane.xlu1 %1445 }
 0x2ab   :  { %v1447_v9 = vsub.f32 %v1443_v46, %v1446_v8 }
 0x2ad   :  { %v1448_v14 = vmul.f32 1.442695, %v1447_v9 }
 0x2ae   :  { %v4491_v43 = vpop.permute.xlu1 %502 }
 0x2af   :  { %v4114_v17 = vpop.eup %4113  ;;  %4115 = vpow2.f32 %v1448_v14  ;;  %v572_v49 = vadd.f32 %v4420_v12, %v4491_v43  ;;  %v4535_v14 = vld [vmem:[%s4800_s3 + $0x8] sm:$0xff] }
 0x2b0   :  { %v1286_v19 = vsel %vm1201_vm3, %v4114_v17, 0.0  ;;  %3984 = vmatpush3.msra.mxu1 %v4535_v14 }
 0x2b1   :  { %1287 = vadd.xlane.f32.xlu1 %v1286_v19  ;;  %3993 = vmatprep.subr.mxu1 %v4166_v48 }
 0x2bc   :  { %v4116_v20 = vpop.eup %4115 }
 0x2bd   :  { %v1450_v24 = vsel %vm1201_vm3, %v4116_v20, 0.0 }
 0x2be   :  { %1451 = vadd.xlane.f32.xlu0 %v1450_v24 }
 0x2cd   :  { %v1610_v25 = vpop.xlane.xlu0 %1609 }
 0x2ce   :  { %v1611_v28 = vsub.f32 %v1607_v52, %v1610_v25 }
 0x2d0   :  { %v1612_v29 = vmul.f32 1.442695, %v1611_v28 }
 0x2d2   :  { %4117 = vpow2.f32 %v1612_v29 }
 0x2d8   :  { %v1774_v31 = vpop.xlane.xlu0 %1773 }
 0x2d9   :  { %v1775_v34 = vsub.f32 %v1771_v61, %v1774_v31  ;;  %v4548_v31 = vld [vmem:[%s4800_s3 + $0x18] sm:$0xff] }
 0x2db   :  { %v1776_v35 = vmul.f32 1.442695, %v1775_v34  ;;  %v4553_v34 = vld [vmem:[%s4800_s3 + $0x10] sm:$0xff] }
 0x2dd   :  { %4119 = vpow2.f32 %v1776_v35 }
 0x2df   :  { %v4118_v37 = vpop.eup %4117 }
 0x2e0   :  { %v1614_v38 = vsel %vm1201_vm3, %v4118_v37, 0.0 }
 0x2e1   :  { %1615 = vadd.xlane.f32.xlu1 %v1614_v38  ;;  %v3635_v38 = vld [vmem:[%s4799_s1 + $0x8] sm:$0xff] }
 0x2ea   :  { %v4120_v39 = vpop.eup %4119 }
 0x2eb   :  { %v1778_v40 = vsel %vm1201_vm3, %v4120_v39, 0.0 }
 0x2ec   :  { %1779 = vadd.xlane.f32.xlu0 %v1778_v40 }
 0x2f2   :  { %1042 = vrot.lane.b32.xlu1 %v4390_v59, %s4164_s21 }
 0x302   :  { %772 = vrot.lane.b32.xlu0 %v4390_v59, %s4159_s16 }
 0x33a   :  { %v1288_v44 = vpop.xlane.xlu1 %1287 }
 0x33b   :  { %4121 = vrcp.f32 %v1288_v44 }
 0x347   :  { %v1452_v45 = vpop.xlane.xlu0 %1451 }
 0x348   :  { %v4122_v46 = vpop.eup %4121  ;;  %4123 = vrcp.f32 %v1452_v45  ;;  %v116_v45 = vadd.f32 %v4381_v54, %v4313_v7  ;;  %v395_v7 = vadd.f32 %v4408_v4, %v4410_v5  ;;  %v757_v54 = vadd.f32 %v4424_v15, %v4422_v13 }
 0x349   :  { %v1290_v47 = vmul.f32 %v4122_v46, %v4114_v17 }
 0x34b   :  { %v1291_v50 = vsel %vm1200_vm5, 0.0, %v1290_v47 }
 0x34c   :  { %3951 = vmatmul.mubr.msk.f32.vlgmr.msra.gmra.mxu0 %vm1201_vm3, %v1291_v50 }
 0x34d   :  { %3959 = vmatpush3.msra.mxu0 %v572_v49  ;;  %3960 = vmatprep.mubr.msk.f32.mxu0 %vm4167_vm2, %v4166_v48 }
 0x34e   :  { %3968 = vmatprep.subr.mxu0 %v4166_v48 }
 0x355   :  { %v4124_v51 = vpop.eup %4123 }
 0x356   :  { %v1454_v52 = vmul.f32 %v4124_v51, %v4116_v20 }
 0x358   :  { %v1455_v53 = vsel %vm1200_vm5, 0.0, %v1454_v52 }
 0x359   :  { %3961 = vmatmul.mubr.msk.f32.vlgmr.msra.gmra.mxu0 %vm1201_vm3, %v1455_v53 }
 0x35a   :  { %3970 = vmatprep.mubr.msk.f32.mxu0 %vm4167_vm2, %v4166_v48 }
 0x36a   :  { %v1616_v12 = vpop.xlane.xlu1 %1615 }
 0x36b   :  { %4125 = vrcp.f32 %v1616_v12 }
 0x36e   :  { %v4507_v60 = vpop.permute.xlu1 %1042 }
 0x36f   :  { %v1112_v3 = vadd.f32 %v4470_v42, %v4507_v60  ;;  %v4530_v42 = vld [vmem:[%s4800_s3] sm:$0xff] }
 0x375   :  { %v1780_v55 = vpop.xlane.xlu0 %1779 }
 0x376   :  { %4127 = vrcp.f32 %v1780_v55 }
 0x378   :  { %v4126_v58 = vpop.eup %4125 }
 0x379   :  { %v4509_v61 = vpop.permute.xlu0 %772  ;;  %v1618_v62 = vmul.f32 %v4126_v58, %v4118_v37 }
 0x37a   :  { %v842_v63 = vadd.f32 %v4433_v21, %v4509_v61 }
 0x37b   :  { %v1619_v2 = vsel %vm1200_vm5, 0.0, %v1618_v62 }
 0x37c   :  { %3969 = vmatpush3.msra.mxu0 %v842_v63 }
 0x37d   :  { %3971 = vmatmul.mubr.msk.f32.vlgmr.msra.gmra.mxu0 %vm1201_vm3, %v1619_v2  ;;  %3978 = vmatprep.subr.mxu0 %v4166_v48 }
 0x37e   :  { %3979 = vmatpush3.msra.mxu0 %v1112_v3  ;;  %3980 = vmatprep.mubr.msk.f32.mxu0 %vm4167_vm2, %v4166_v48 }
 0x37f   :  { %3988 = vmatprep.subr.mxu0 %v4166_v48 }
 0x383   :  { %v4128_v8 = vpop.eup %4127 }
 0x384   :  { %v1782_v9 = vmul.f32 %v4128_v8, %v4120_v39  ;;  %v212_v39 = vadd.f32 %v4383_v56, %v4308_v6  ;;  %v304_v6 = vadd.f32 %v4385_v57, %v4390_v59  ;;  %v486_v56 = vadd.f32 %v4398_v0, %v4400_v1 }
 0x385   :  { %v667_v57 = vadd.f32 %v4418_v11, %v4428_v18  ;;  %v1027_v59 = vadd.f32 %v4436_v22, %v4439_v23  ;;  %v937_v0 = vadd.f32 %v4445_v26, %v4448_v27 }
 0x386   :  { %v1783_v21 = vsel %vm1200_vm5, 0.0, %v1782_v9 }
 0x387   :  { %3981 = vmatmul.mubr.msk.f32.vlgmr.msra.gmra.mxu0 %vm1201_vm3, %v1783_v21 }
 0x388   :  { %3990 = vmatprep.mubr.msk.f32.mxu0 %vm4167_vm2, %v4166_v48  ;;  %3989 = vmatpush3.msra.mxu0 %v4530_v42 }
 0x389   :  { %3998 = vmatprep.subr.mxu0 %v4166_v48 }
 0x40c   :  { %v1361_v30 = vpop.f32.mrf.mxu0 }
 0x40d   :  { %1365 = vst.msk [vmem:[#allocation2] sm:$0xff] %vm1201_vm3, %v1361_v30 }
 0x40e   :  { %v3952_v17 = vpop.f32.mrf.mxu0 }
 0x419   :  { %v1525_v19 = vpop.f32.mrf.mxu0 }
 0x41a   :  { %1529 = vst.msk [vmem:[#allocation2 + $0x8] sm:$0xff] %vm1201_vm3, %v1525_v19 }
 0x41b   :  { %v3962_v20 = vpop.f32.mrf.mxu0 }
 0x43d   :  { %v1689_v24 = vpop.f32.mrf.mxu0 }
 0x43e   :  { %1693 = vst.msk [vmem:[#allocation2 + $0x10] sm:$0xff] %vm1201_vm3, %v1689_v24 }
 0x43f   :  { %v3972_v25 = vpop.f32.mrf.mxu0 }
 0x447   :  { %v1853_v28 = vpop.f32.mrf.mxu0 }
 0x448   :  { %1857 = vst.msk [vmem:[#allocation2 + $0x18] sm:$0xff] %vm1201_vm3, %v1853_v28 }
 0x449   :  { %v3982_v29 = vpop.f32.mrf.mxu0 }
 0x44f   :  { %v1861_v35 = vld [vmem:[#allocation2 + $0x1] ss:$4 sm:$0xff]  ;;  %v1858_v37 = vld [vmem:[#allocation2] ss:$4 sm:$0xff]  ;;  %v2010_v40 = vld [vmem:[#allocation2 + $0x2] ss:$4 sm:$0xff] }
 0x450   :  { %3986 = vmatmul.mubr.msk.f32.vlgmr.msra.gmra.mxu1 %vm1201_vm3, %v1861_v35  ;;  %3991 = vmatmul.mubr.msk.f32.vlgmr.msra.gmra.mxu0 %vm1201_vm3, %v1858_v37  ;;  %v2087_v44 = vld [vmem:[#allocation2 + $0x3] ss:$4 sm:$0xff] }
 0x451   :  { %3999 = vmatpush3.msra.mxu0 %v4548_v31  ;;  %3994 = vmatpush3.msra.mxu1 %v4553_v34 }
 0x452   :  { %3995 = vmatprep.mubr.msk.f32.mxu1 %vm4167_vm2, %v4166_v48  ;;  %4000 = vmatprep.mubr.msk.f32.mxu0 %vm4167_vm2, %v4166_v48 }
 0x453   :  { %4003 = vmatprep.subr.mxu1 %v4166_v48  ;;  %4008 = vmatprep.subr.mxu0 %v4166_v48 }
 0x454   :  { %3996 = vmatmul.mubr.msk.f32.vlgmr.msra.gmra.mxu1 %vm1201_vm3, %v2010_v40  ;;  %4001 = vmatmul.mubr.msk.f32.vlgmr.msra.gmra.mxu0 %vm1201_vm3, %v2087_v44 }
 0x455   :  { %4004 = vmatpush3.xpose.msk.msra.mxu1 %vm1126_vm1, %v3635_v38  ;;  %4009 = vmatpush3.xpose.msk.msra.mxu0 %vm1201_vm3, %v212_v39 }
 0x456   :  { %4005 = vmatprep.mubr.msk.f32.mxu1 %vm4167_vm2, %v4166_v48  ;;  %4010 = vmatprep.mubr.msk.f32.mxu0 %vm4167_vm2, %v4166_v48 }
 0x457   :  { %4013 = vmatprep.subr.mxu1 %v4166_v48  ;;  %4018 = vmatprep.subr.mxu0 %v4166_v48 }
 0x458   :  { %4006 = vmatmul.mubr.msk.f32.vlgmr.msra.gmra.mxu1 %vm1126_vm1, %v3635_v38  ;;  %4011 = vmatmul.mubr.msk.f32.vlgmr.msra.gmra.mxu0 %vm1201_vm3, %v116_v45 }
 0x459   :  { %4014 = vmatpush3.msra.mxu1 %v304_v6  ;;  %4019 = vmatpush3.xpose.msk.msra.mxu0 %vm1201_vm3, %v486_v56  ;;  %v4636_v6 = vld [vmem:[%s4798_s6 + $0x3] ss:$0 sm:$0xff] }
 0x45a   :  { %4020 = vmatprep.mubr.msk.f32.mxu0 %vm4167_vm2, %v4166_v48  ;;  %4028 = vmatprep.subr.mxu0 %v4166_v48 }
 0x45b   :  { %4015 = vmatprep.mubr.msk.f32.mxu1 %vm4167_vm2, %v4166_v48  ;;  %4023 = vmatprep.subr.mxu1 %v4166_v48 }
 0x45c   :  { %4021 = vmatmul.mubr.msk.f32.vlgmr.msra.gmra.mxu0 %vm1201_vm3, %v395_v7 }
 0x45d   :  { %4029 = vmatpush3.xpose.msk.msra.mxu0 %vm1201_vm3, %v757_v54  ;;  %4030 = vmatprep.mubr.msk.f32.mxu0 %vm4167_vm2, %v4166_v48 }
 0x45e   :  { %4038 = vmatprep.subr.mxu0 %v4166_v48 }
 0x460   :  { %4031 = vmatmul.mubr.msk.f32.vlgmr.msra.gmra.mxu0 %vm1201_vm3, %v667_v57 }
 0x461   :  { %4039 = vmatpush3.xpose.msk.msra.mxu0 %vm1201_vm3, %v1027_v59  ;;  %4040 = vmatprep.mubr.msk.f32.mxu0 %vm4167_vm2, %v4166_v48 }
 0x462   :  { %4048 = vmatprep.subr.mxu0 %v4166_v48 }
 0x464   :  { %4041 = vmatmul.mubr.msk.f32.vlgmr.msra.gmra.mxu0 %vm1201_vm3, %v937_v0  ;;  %v4153_v0 = vld [vmem:[%s4797_s0] sm:$0xff] }
 0x465   :  { %4049 = vmatpush3.msra.mxu0 %v4535_v14  ;;  %4050 = vmatprep.mubr.msk.f32.mxu0 %vm4167_vm2, %v4166_v48 }
 0x466   :  { %4058 = vmatprep.subr.mxu0 %v4166_v48 }
 0x510   :  { %v1932_v1 = vpop.f32.mrf.mxu1  ;;  %v2005_v4 = vpop.f32.mrf.mxu0 }
 0x511   :  { %v2006_v5 = vadd.f32 %v2005_v4, %v1932_v1 }
 0x512   :  { %v3987_v11 = vpop.f32.mrf.mxu1  ;;  %v3992_v13 = vpop.f32.mrf.mxu0 }
 0x514   :  { %v2081_v15 = vpop.f32.mrf.mxu1  ;;  %v2158_v18 = vpop.f32.mrf.mxu0 }
 0x515   :  { %v2085_v22 = vadd.f32 %v2081_v15, %v2006_v5 }
 0x516   :  { %v3997_v23 = vpop.f32.mrf.mxu1  ;;  %v4002_v26 = vpop.f32.mrf.mxu0 }
 0x517   :  { %v2162_v27 = vadd.f32 %v2158_v18, %v2085_v22 }
 0x518   :  { %v2311_v46 = vpop.f32.mrf.mxu0  ;;  %v2234_v13 = vpop.f32.mrf.mxu1 }
 0x519   :  { %v2315_v47 = vmul.f32 0.35355338, %v2311_v46  ;;  %v3202_v7 = vadd.f32 %v4636_v6, %v2162_v27  ;;  %vm2238_vm6 = vcmp.eq.f32.partialorder %v2234_v13, 0.0 }
 0x51a   :  { %v4012_v49 = vpop.f32.mrf.mxu0  ;;  %v4007_v15 = vpop.f32.mrf.mxu1 }
 0x51b   :  { %v2316_v50 = vsel %vm4461_vm4, -1e+30, %v2315_v47  ;;  %v3204_v1 = vadd.f32 %v4153_v0, %v3202_v7 }
 0x51c   :  { %v2475_v51 = vpop.f32.mrf.mxu0  ;;  %v2317_v52 = vsel %vm1201_vm3, %v2316_v50, -inf }
 0x51d   :  { %v2479_v53 = vmul.f32 0.35355338, %v2475_v51  ;;  %2318 = vmax.xlane.f32.xlu1 %v2317_v52  ;;  %v3206_v5 = vsel %vm37_vm0, %v3204_v1, 0.0  ;;  %v577_v51 = vadd.f32 %v4416_v10, %v4491_v43 }
 0x51e   :  { %v4022_v12 = vpop.f32.mrf.mxu0 }
 0x51f   :  { %v2480_v55 = vsel %vm4461_vm4, -1e+30, %v2479_v53 }
 0x520   :  { %v2639_v58 = vpop.f32.mrf.mxu0  ;;  %v2481_v62 = vsel %vm1201_vm3, %v2480_v55, -inf }
 0x521   :  { %v2643_v63 = vmul.f32 0.35355338, %v2639_v58  ;;  %2482 = vmax.xlane.f32.xlu0 %v2481_v62  ;;  %v847_v62 = vadd.f32 %v4426_v16, %v4509_v61 }
 0x522   :  { %v4032_v2 = vpop.f32.mrf.mxu0 }
 0x523   :  { %v2644_v3 = vsel %vm4461_vm4, -1e+30, %v2643_v63  ;;  %v1117_v2 = vadd.f32 %v4468_v41, %v4507_v60 }
 0x524   :  { %v2803_v8 = vpop.f32.mrf.mxu0  ;;  %v2645_v9 = vsel %vm1201_vm3, %v2644_v3, -inf }
 0x525   :  { %v2807_v21 = vmul.f32 0.35355338, %v2803_v8  ;;  %2646 = vmax.xlane.f32.xlu0 %v2645_v9 }
 0x526   :  { %v4042_v14 = vpop.f32.mrf.mxu0 }
 0x527   :  { %v2808_v30 = vsel %vm4461_vm4, -1e+30, %v2807_v21 }
 0x528   :  { %v2809_v17 = vsel %vm1201_vm3, %v2808_v30, -inf }
 0x529   :  { %2810 = vmax.xlane.f32.xlu1 %v2809_v17 }
 0x5a6   :  { %v2319_v19 = vpop.xlane.xlu1 %2318 }
 0x5a7   :  { %v2320_v20 = vsub.f32 %v2316_v50, %v2319_v19 }
 0x5a9   :  { %v2321_v24 = vmul.f32 1.442695, %v2320_v20 }
 0x5aa   :  { %v2483_v25 = vpop.xlane.xlu0 %2482 }
 0x5ab   :  { %4129 = vpow2.f32 %v2321_v24  ;;  %v2484_v28 = vsub.f32 %v2480_v55, %v2483_v25 }
 0x5ad   :  { %v2485_v29 = vmul.f32 1.442695, %v2484_v28 }
 0x5ae   :  { %v2647_v35 = vpop.xlane.xlu0 %2646 }
 0x5af   :  { %4131 = vpow2.f32 %v2485_v29  ;;  %v2648_v37 = vsub.f32 %v2644_v3, %v2647_v35  ;;  %v4681_v29 = vld [vmem:[%s4798_s6 + $0x4] ss:$0 sm:$0xff] }
 0x5b1   :  { %v2649_v38 = vmul.f32 1.442695, %v2648_v37 }
 0x5b2   :  { %v2811_v39 = vpop.xlane.xlu1 %2810 }
 0x5b3   :  { %4133 = vpow2.f32 %v2649_v38  ;;  %v2812_v40 = vsub.f32 %v2808_v30, %v2811_v39  ;;  %v4689_v39 = vld [vmem:[%s4798_s6 + $0x5] ss:$0 sm:$0xff] }
 0x5b5   :  { %v2813_v44 = vmul.f32 1.442695, %v2812_v40 }
 0x5b7   :  { %4135 = vpow2.f32 %v2813_v44 }
 0x5b8   :  { %v4130_v36 = vpop.eup %4129 }
 0x5b9   :  { %v2323_v45 = vsel %vm1201_vm3, %v4130_v36, 0.0 }
 0x5ba   :  { %2324 = vadd.xlane.f32.xlu0 %v2323_v45 }
 0x5bc   :  { %v4132_v56 = vpop.eup %4131 }
 0x5bd   :  { %v2487_v54 = vsel %vm1201_vm3, %v4132_v56, 0.0 }
 0x5be   :  { %2488 = vadd.xlane.f32.xlu1 %v2487_v54 }
 0x5c0   :  { %v4134_v57 = vpop.eup %4133 }
 0x5c1   :  { %v2651_v59 = vsel %vm1201_vm3, %v4134_v57, 0.0 }
 0x5c2   :  { %2652 = vadd.xlane.f32.xlu0 %v2651_v59 }
 0x5c4   :  { %v4136_v4 = vpop.eup %4135 }
 0x5c5   :  { %v2815_v11 = vsel %vm1201_vm3, %v4136_v4, 0.0 }
 0x5c6   :  { %3207 = vadd.xlane.f32.xlu0 %v3206_v5  ;;  %2816 = vadd.xlane.f32.xlu1 %v2815_v11  ;;  %v4154_v5 = vld [vmem:[%s4797_s0 + $0x8] sm:$0xff] }
 0x643   :  { %v2325_v18 = vpop.xlane.xlu0 %2324 }
 0x644   :  { %4137 = vrcp.f32 %v2325_v18 }
 0x647   :  { %v2489_v22 = vpop.xlane.xlu1 %2488 }
 0x648   :  { %4139 = vrcp.f32 %v2489_v22 }
 0x64b   :  { %v2653_v23 = vpop.xlane.xlu0 %2652 }
 0x64c   :  { %4141 = vrcp.f32 %v2653_v23 }
 0x64f   :  { %v3208_v26 = vpop.xlane.xlu0 %3207  ;;  %v2817_v27 = vpop.xlane.xlu1 %2816 }
 0x650   :  { %v3213_v46 = vmul.f32 0.03125, %v3208_v26  ;;  %4143 = vrcp.f32 %v2817_v27  ;;  %v3250_v27 = vld [vmem:[%s4801_s4 + $0x18] sm:$0xff] }
 0x651   :  { %v4138_v47 = vpop.eup %4137 }
 0x652   :  { %v3215_v49 = vsub.f32 %v3204_v1, %v3213_v46  ;;  %v2327_v50 = vmul.f32 %v4138_v47, %v4130_v36  ;;  %v3248_v46 = vld [vmem:[%s4801_s4 + $0x8] sm:$0xff]  ;;  %v3247_v47 = vld [vmem:[%s4801_s4] sm:$0xff] }
 0x654   :  { %v2328_v52 = vsel %vm2238_vm6, 0.0, %v2327_v50  ;;  %v3217_v53 = vmul.f32 %v3215_v49, %v3215_v49  ;;  %v3345_v50 = vld [vmem:[%s4802_s5 + $0x30] sm:$0xff] }
 0x655   :  { %v4140_v12 = vpop.eup %4139  ;;  %4016 = vmatmul.mubr.msk.f32.vlgmr.msra.gmra.mxu1 %vm1201_vm3, %v2328_v52  ;;  %v3343_v52 = vld [vmem:[%s4802_s5 + $0x20] sm:$0xff] }
 0x656   :  { %v2491_v55 = vmul.f32 %v4140_v12, %v4132_v56  ;;  %4024 = vmatpush3.msra.mxu1 %v577_v51  ;;  %v3219_v58 = vsel %vm37_vm0, %v3217_v53, 0.0  ;;  %4025 = vmatprep.mubr.msk.f32.mxu1 %vm4167_vm2, %v4166_v48  ;;  %v3344_v51 = vld [vmem:[%s4802_s5 + $0x28] sm:$0xff] }
 0x657   :  { %3220 = vadd.xlane.f32.xlu0 %v3219_v58  ;;  %4033 = vmatprep.subr.mxu1 %v4166_v48 }
 0x658   :  { %v2492_v10 = vsel %vm2238_vm6, 0.0, %v2491_v55 }
 0x659   :  { %v4142_v43 = vpop.eup %4141  ;;  %4026 = vmatmul.mubr.msk.f32.vlgmr.msra.gmra.mxu1 %vm1201_vm3, %v2492_v10 }
 0x65a   :  { %v2655_v63 = vmul.f32 %v4142_v43, %v4134_v57  ;;  %4034 = vmatpush3.msra.mxu1 %v847_v62  ;;  %4035 = vmatprep.mubr.msk.f32.mxu1 %vm4167_vm2, %v4166_v48 }
 0x65b   :  { %4043 = vmatprep.subr.mxu1 %v4166_v48 }
 0x65c   :  { %v2656_v3 = vsel %vm2238_vm6, 0.0, %v2655_v63  ;;  %v3342_v63 = vld [vmem:[%s4802_s5 + $0x18] sm:$0xff] }
 0x65d   :  { %v4144_v8 = vpop.eup %4143  ;;  %4036 = vmatmul.mubr.msk.f32.vlgmr.msra.gmra.mxu1 %vm1201_vm3, %v2656_v3  ;;  %v3340_v3 = vld [vmem:[%s4802_s5 + $0x8] sm:$0xff] }
 0x65e   :  { %v2819_v16 = vmul.f32 %v4144_v8, %v4136_v4  ;;  %4044 = vmatpush3.msra.mxu1 %v1117_v2  ;;  %4045 = vmatprep.mubr.msk.f32.mxu1 %vm4167_vm2, %v4166_v48  ;;  %v3341_v2 = vld [vmem:[%s4802_s5 + $0x10] sm:$0xff]  ;;  %v3339_v8 = vld [vmem:[%s4802_s5] sm:$0xff] }
 0x65f   :  { %4053 = vmatprep.subr.mxu1 %v4166_v48 }
 0x660   :  { %v2820_v61 = vsel %vm2238_vm6, 0.0, %v2819_v16  ;;  %v3657_v16 = vld [vmem:[%s4798_s6 + $0x6] ss:$0 sm:$0xff] }
 0x661   :  { %4046 = vmatmul.mubr.msk.f32.vlgmr.msra.gmra.mxu1 %vm1201_vm3, %v2820_v61 }
 0x662   :  { %4054 = vmatpush3.msra.mxu1 %v4530_v42  ;;  %4055 = vmatprep.mubr.msk.f32.mxu1 %vm4167_vm2, %v4166_v48 }
 0x663   :  { %4063 = vmatprep.subr.mxu1 %v4166_v48 }
 0x6e0   :  { %v3221_v41 = vpop.xlane.xlu0 %3220 }
 0x6e1   :  { %v3225_v60 = vmul.f32 0.03125, %v3221_v41 }
 0x6e3   :  { %v3227_v9 = vadd.f32 1e-05, %v3225_v60 }
 0x6e5   :  { %4145 = vrsqrt.f32 %v3227_v9 }
 0x6f2   :  { %v4146_v24 = vpop.eup %4145 }
 0x6f3   :  { %v3231_v28 = vmul.f32 %v4146_v24, %v3215_v49  ;;  %v3346_v49 = vld [vmem:[%s4802_s5 + $0x38] sm:$0xff] }
 0x6f5   :  { %v3238_v38 = vmul.f32 %v4681_v29, %v3231_v28 }
 0x6f7   :  { %v4698_v36 = vadd.f32 %v4689_v39, %v3238_v38 }
 0x715   :  { %v2398_v21 = vpop.f32.mrf.mxu1 }
 0x716   :  { %2402 = vst.msk [vmem:[#allocation2] sm:$0xff] %vm1201_vm3, %v2398_v21 }
 0x717   :  { %v4017_v14 = vpop.f32.mrf.mxu1 }
 0x719   :  { %v2562_v30 = vpop.f32.mrf.mxu1 }
 0x71a   :  { %2566 = vst.msk [vmem:[#allocation2 + $0x8] sm:$0xff] %vm1201_vm3, %v2562_v30  ;;  %v3660_v30 = vld [vmem:[%s4798_s6 + $0x7] ss:$0 sm:$0xff] }
 0x71b   :  { %v4027_v17 = vpop.f32.mrf.mxu1 }
 0x71d   :  { %v2726_v19 = vpop.f32.mrf.mxu1 }
 0x71e   :  { %2730 = vst.msk [vmem:[#allocation2 + $0x10] sm:$0xff] %vm1201_vm3, %v2726_v19 }
 0x71f   :  { %v4037_v42 = vpop.f32.mrf.mxu1 }
 0x721   :  { %v2890_v20 = vpop.f32.mrf.mxu1 }
 0x722   :  { %2894 = vst.msk [vmem:[#allocation2 + $0x18] sm:$0xff] %vm1201_vm3, %v2890_v20 }
 0x723   :  { %v4047_v25 = vpop.f32.mrf.mxu1 }
 0x729   :  { %v2897_v35 = vld [vmem:[#allocation2 + $0x1] ss:$4 sm:$0xff]  ;;  %v2895_v37 = vld [vmem:[#allocation2] ss:$4 sm:$0xff]  ;;  %v3045_v40 = vld [vmem:[#allocation2 + $0x2] ss:$4 sm:$0xff] }
 0x72a   :  { %4051 = vmatmul.mubr.msk.f32.vlgmr.msra.gmra.mxu0 %vm1201_vm3, %v2897_v35  ;;  %4056 = vmatmul.mubr.msk.f32.vlgmr.msra.gmra.mxu1 %vm1201_vm3, %v2895_v37  ;;  %v3121_v44 = vld [vmem:[#allocation2 + $0x3] ss:$4 sm:$0xff] }
 0x72b   :  { %4059 = vmatpush3.msra.mxu0 %v4553_v34  ;;  %4064 = vmatpush3.msra.mxu1 %v4548_v31 }
 0x72c   :  { %4060 = vmatprep.mubr.msk.f32.mxu0 %vm4167_vm2, %v4166_v48  ;;  %4065 = vmatprep.mubr.msk.f32.mxu1 %vm4167_vm2, %v4166_v48 }
 0x72d   :  { %4068 = vmatprep.subr.mxu0 %v3250_v27  ;;  %4079 = vmatprep.subr.mxu1 %v3346_v49 }
 0x72e   :  { %4061 = vmatmul.mubr.msk.f32.vlgmr.msra.gmra.mxu0 %vm1201_vm3, %v3045_v40  ;;  %4066 = vmatmul.mubr.msk.f32.vlgmr.msra.gmra.mxu1 %vm1201_vm3, %v3121_v44 }
 0x72f   :  { %4076 = vmatprep.mubr.msk.f32.mxu0 %vm37_vm0, %v4698_v36  ;;  %4069 = vmatpush3.msra.mxu0 %v3250_v27 }
 0x730   :  { %4080 = vmatpush3.msra.mxu1 %v3346_v49 }
 0x731   :  { %4081 = vmatprep.subr.mxu1 %v3345_v50 }
 0x732   :  { %4082 = vmatpush3.msra.mxu1 %v3345_v50 }
 0x733   :  { %4083 = vmatprep.subr.mxu1 %v3344_v51 }
 0x734   :  { %4084 = vmatpush3.msra.mxu1 %v3344_v51 }
 0x735   :  { %4085 = vmatprep.subr.mxu1 %v3343_v52 }
 0x736   :  { %4086 = vmatpush3.msra.mxu1 %v3343_v52 }
 0x737   :  { %4087 = vmatprep.subr.mxu1 %v3342_v63 }
 0x738   :  { %4088 = vmatpush3.msra.mxu1 %v3342_v63 }
 0x739   :  { %4089 = vmatprep.subr.mxu1 %v3341_v2 }
 0x73a   :  { %4090 = vmatpush3.msra.mxu1 %v3341_v2 }
 0x73b   :  { %4091 = vmatprep.subr.mxu1 %v3340_v3 }
 0x73c   :  { %4092 = vmatpush3.msra.mxu1 %v3340_v3  ;;  %v4169_v3 = vmov 1966171168  }
 0x73d   :  { %4093 = vmatprep.subr.mxu1 %v3339_v8 }
 0x73e   :  { %4094 = vmatpush3.msra.mxu1 %v3339_v8  ;;  %v3514_v8 = vunpack.c.l.s4 %v4169_v3 }
 0x7ea   :  { %v2968_v34 = vpop.f32.mrf.mxu0  ;;  %v3041_v31 = vpop.f32.mrf.mxu1 }
 0x7eb   :  { %v3042_v7 = vadd.f32 %v3041_v31, %v2968_v34 }
 0x7ec   :  { %v4052_v45 = vpop.f32.mrf.mxu0  ;;  %v4057_v56 = vpop.f32.mrf.mxu1 }
 0x7ee   :  { %v3116_v54 = vpop.f32.mrf.mxu0  ;;  %v3192_v57 = vpop.f32.mrf.mxu1 }
 0x7ef   :  { %v3120_v48 = vadd.f32 %v3116_v54, %v3042_v7 }
 0x7f0   :  { %v4062_v59 = vpop.f32.mrf.mxu0  ;;  %v4067_v0 = vpop.f32.mrf.mxu1 }
 0x7f1   :  { %v3196_v1 = vadd.f32 %v3192_v57, %v3120_v48 }
 0x7f3   :  { %v3203_v4 = vadd.f32 %v4636_v6, %v3196_v1  ;;  %v3249_v6 = vld [vmem:[%s4801_s4 + $0x10] sm:$0xff]  ;;  %v3663_v1 = vld [vmem:[%s4798_s6 + $0x8] ss:$0 sm:$0xff] }
 0x7f4   :  { %4070 = vmatprep.subr.mxu0 %v3249_v6 }
 0x7f5   :  { %v3205_v11 = vadd.f32 %v4154_v5, %v3203_v4  ;;  %4071 = vmatpush3.msra.mxu0 %v3249_v6 }
 0x7f6   :  { %4072 = vmatprep.subr.mxu0 %v3248_v46 }
 0x7f7   :  { %v3209_v13 = vsel %vm37_vm0, %v3205_v11, 0.0  ;;  %4073 = vmatpush3.msra.mxu0 %v3248_v46 }
 0x7f8   :  { %3210 = vadd.xlane.f32.xlu1 %v3209_v13  ;;  %4074 = vmatprep.subr.mxu0 %v3247_v47 }
 0x7f9   :  { %4075 = vmatpush3.msra.mxu0 %v3247_v47 }
 0x881   :  { %v3211_v15 = vpop.xlane.xlu1 %3210 }
 0x882   :  { %v3214_v18 = vmul.f32 0.03125, %v3211_v15 }
 0x884   :  { %v3216_v22 = vsub.f32 %v3205_v11, %v3214_v18  ;;  %v3664_v11 = vld [vmem:[%s4798_s6 + $0x9] ss:$0 sm:$0xff] }
 0x886   :  { %v3218_v23 = vmul.f32 %v3216_v22, %v3216_v22 }
 0x888   :  { %v3222_v26 = vsel %vm37_vm0, %v3218_v23, 0.0 }
 0x889   :  { %3223 = vadd.xlane.f32.xlu1 %v3222_v26 }
 0x912   :  { %v3224_v53 = vpop.xlane.xlu1 %3223 }
 0x913   :  { %v3226_v12 = vmul.f32 0.03125, %v3224_v53 }
 0x915   :  { %v3228_v55 = vadd.f32 1e-05, %v3226_v12 }
 0x917   :  { %4147 = vrsqrt.f32 %v3228_v55 }
 0x924   :  { %v4148_v58 = vpop.eup %4147 }
 0x925   :  { %v3232_v62 = vmul.f32 %v4148_v58, %v3216_v22 }
 0x927   :  { %v3239_v10 = vmul.f32 %v4681_v29, %v3232_v62 }
 0x929   :  { %v3246_v43 = vadd.f32 %v4689_v39, %v3239_v10 }
 0x92b   :  { %4077 = vmatmul.mubr.msk.f32.vlgmr.msra.gmra.mxu0 %vm37_vm0, %v3246_v43 }
 0x9eb   :  { %v4078_v61 = vpop.f32.mrf.mxu0 }
 0x9ec   :  { %v3334_v41 = vadd.f32 %v4078_v61, %v3657_v16 }
 0x9ed   :  { %v3328_v60 = vpop.f32.mrf.mxu0 }
 0x9ee   :  { %v3329_v9 = vadd.f32 %v3657_v16, %v3328_v60  ;;  %v3338_v14 = vmax.f32 %v3334_v41, 0.0  ;;  %v3515_v41 = vunpack.c.0.s8 %v3514_v8 }
 0x9f0   :  { %v3337_v21 = vmax.f32 %v3329_v9, 0.0 }
 0x9f2   :  { %4095 = vmatprep.mubr.msk.f32.mxu1 %vm3352_vm7, %v3337_v21 }
 0x9f3   :  { %4096 = vmatmul.mubr.msk.f32.vlgmr.msra.gmra.mxu1 %vm3352_vm7, %v3338_v14 }
 0xab3   :  { %v4097_v17 = vpop.f32.mrf.mxu1 }
 0xab4   :  { %v3431_v19 = vadd.f32 %v4097_v17, %v3660_v30 }
 0xab5   :  { %v3425_v42 = vpop.f32.mrf.mxu1 }
 0xab6   :  { %v3426_v20 = vadd.f32 %v3660_v30, %v3425_v42  ;;  %v3435_v24 = vadd.f32 %v3431_v19, %v3246_v43  ;;  %v3518_v19 = vsub.s32 %v3515_v41, %v4457_v33 }
 0xab8   :  { %v3439_v25 = vsel %vm37_vm0, %v3435_v24, 0.0  ;;  %v3434_v28 = vadd.f32 %v3426_v20, %v4698_v36 }
 0xab9   :  { %3440 = vadd.xlane.f32.xlu1 %v3439_v25 }
 0xaba   :  { %v3436_v29 = vsel %vm37_vm0, %v3434_v28, 0.0 }
 0xabb   :  { %3437 = vadd.xlane.f32.xlu0 %v3436_v29 }
 0xb42   :  { %v3441_v35 = vpop.xlane.xlu1 %3440 }
 0xb43   :  { %v3443_v37 = vmul.f32 0.03125, %v3441_v35 }
 0xb44   :  { %v3438_v38 = vpop.xlane.xlu0 %3437 }
 0xb45   :  { %v3445_v39 = vsub.f32 %v3435_v24, %v3443_v37  ;;  %v3442_v40 = vmul.f32 0.03125, %v3438_v38 }
 0xb47   :  { %v3444_v44 = vsub.f32 %v3434_v28, %v3442_v40  ;;  %v3447_v34 = vmul.f32 %v3445_v39, %v3445_v39 }
 0xb49   :  { %v3451_v31 = vsel %vm37_vm0, %v3447_v34, 0.0  ;;  %v3446_v45 = vmul.f32 %v3444_v44, %v3444_v44 }
 0xb4a   :  { %3452 = vadd.xlane.f32.xlu1 %v3451_v31 }
 0xb4b   :  { %v3448_v56 = vsel %vm37_vm0, %v3446_v45, 0.0 }
 0xb4c   :  { %3449 = vadd.xlane.f32.xlu0 %v3448_v56 }
 0xbd3   :  { %v3453_v7 = vpop.xlane.xlu1 %3452 }
 0xbd4   :  { %v3455_v36 = vmul.f32 0.03125, %v3453_v7 }
 0xbd5   :  { %v3450_v54 = vpop.xlane.xlu0 %3449 }
 0xbd6   :  { %v3457_v57 = vadd.f32 1e-05, %v3455_v36  ;;  %v3454_v48 = vmul.f32 0.03125, %v3450_v54 }
 0xbd8   :  { %4149 = vrsqrt.f32 %v3457_v57  ;;  %v3456_v59 = vadd.f32 1e-05, %v3454_v48 }
 0xbda   :  { %4151 = vrsqrt.f32 %v3456_v59 }
 0xbe5   :  { %v4150_v0 = vpop.eup %4149 }
 0xbe6   :  { %v3461_v4 = vmul.f32 %v4150_v0, %v3445_v39 }
 0xbe7   :  { %v4152_v5 = vpop.eup %4151 }
 0xbe8   :  { %v3468_v13 = vmul.f32 %v3663_v1, %v3461_v4  ;;  %v3460_v15 = vmul.f32 %v4152_v5, %v3444_v44 }
 0xbea   :  { %v3475_v18 = vadd.f32 %v3664_v11, %v3468_v13  ;;  %v3467_v22 = vmul.f32 %v3663_v1, %v3460_v15 }
 0xbec   :  { %v3534_v23 = vrot.slane %v3475_v18, 1  ;;  %v3548_v26 = vrot.slane %v3475_v18, 5  ;;  %v3474_v27 = vadd.f32 %v3664_v11, %v3467_v22  ;;  %v3538_v6 = vrot.slane %v3475_v18, 2 }
 0xbed   :  { %v3552_v46 = vrot.slane %v3475_v18, 6  ;;  %v3542_v12 = vrot.slane %v3475_v18, 3  ;;  %v3556_v55 = vrot.slane %v3475_v18, 7  ;;  %v3546_v20 = vrot.slane %v3475_v18, 4 }
 0xbee   :  { %3535 = vrot.lane.b32.xlu1 %v3534_v23, %s4168_s10  ;;  %3549 = vrot.lane.b32.xlu0 %v3548_v26, %s4168_s10  ;;  %v3491_v47 = vrot.slane %v3474_v27, 5  ;;  %v3477_v49 = vrot.slane %v3474_v27, 1  ;;  %v3481_v50 = vrot.slane %v3474_v27, 2  ;;  %v3495_v51 = vrot.slane %v3474_v27, 6 }
 0xbef   :  { %v3485_v52 = vrot.slane %v3474_v27, 3  ;;  %v3499_v53 = vrot.slane %v3474_v27, 7  ;;  %v3489_v60 = vrot.slane %v3474_v27, 4 }
 0xbf2   :  { %3539 = vrot.lane.b32.xlu1 %v3538_v6, %s4156_s27  ;;  %3553 = vrot.lane.b32.xlu0 %v3552_v46, %s4156_s27 }
 0xbf6   :  { %3492 = vrot.lane.b32.xlu1 %v3491_v47, %s4168_s10  ;;  %3478 = vrot.lane.b32.xlu0 %v3477_v49, %s4168_s10 }
 0xbfa   :  { %3482 = vrot.lane.b32.xlu1 %v3481_v50, %s4156_s27  ;;  %3496 = vrot.lane.b32.xlu0 %v3495_v51, %s4156_s27 }
 0xbfe   :  { %3486 = vrot.lane.b32.xlu1 %v3485_v52, %s4155_s26  ;;  %3500 = vrot.lane.b32.xlu0 %v3499_v53, %s4155_s26 }
 0xc02   :  { %3543 = vrot.lane.b32.xlu1 %v3542_v12, %s4155_s26  ;;  %3557 = vrot.lane.b32.xlu0 %v3556_v55, %s4155_s26 }
 0xc60   :  { %v3536_v58 = vpop.permute.xlu1 %3535  ;;  %v3550_v62 = vpop.permute.xlu0 %3549 }
 0xc61   :  { %v3560_v29 = vsel %vm37_vm0, %v3475_v18, %v3536_v58  ;;  %v3563_v35 = vsel %vm37_vm0, %v3546_v20, %v3550_v62 }
 0xc64   :  { %v3540_v10 = vpop.permute.xlu1 %3539  ;;  %v3554_v43 = vpop.permute.xlu0 %3553 }
 0xc65   :  { %v3561_v37 = vsel %vm3352_vm7, %v3560_v29, %v3540_v10  ;;  %v3564_v38 = vsel %vm3352_vm7, %v3563_v35, %v3554_v43 }
 0xc68   :  { %v3493_v63 = vpop.permute.xlu1 %3492  ;;  %v3479_v2 = vpop.permute.xlu0 %3478 }
 0xc69   :  { %v3507_v9 = vsel %vm37_vm0, %v3489_v60, %v3493_v63  ;;  %v3503_v21 = vsel %vm37_vm0, %v3474_v27, %v3479_v2 }
 0xc6c   :  { %v3483_v16 = vpop.permute.xlu1 %3482  ;;  %v3497_v61 = vpop.permute.xlu0 %3496 }
 0xc6d   :  { %v3504_v14 = vsel %vm3352_vm7, %v3503_v21, %v3483_v16  ;;  %v3508_v30 = vsel %vm3352_vm7, %v3507_v9, %v3497_v61 }
 0xc70   :  { %v3487_v17 = vpop.permute.xlu1 %3486  ;;  %v3501_v42 = vpop.permute.xlu0 %3500 }
 0xc71   :  { %v3506_v24 = vsel %vm3505_vm8, %v3504_v14, %v3487_v17  ;;  %v3509_v25 = vsel %vm3505_vm8, %v3508_v30, %v3501_v42 }
 0xc72   :  { %v3512_v28 = vcombine.low %v3506_v24, %v3509_v25 }
 0xc74   :  { %v3519_v39 = vrot.slane %v3512_v28, %v3518_v19  ;;  %v3544_v40 = vpop.permute.xlu1 %3543  ;;  %v3558_v44 = vpop.permute.xlu0 %3557 }
 0xc75   :  { %v3562_v33 = vsel %vm3505_vm8, %v3561_v37, %v3544_v40  ;;  %v3565_v34 = vsel %vm3505_vm8, %v3564_v38, %v3558_v44 }
 0xc76   :  { %v3526_v31 = vrot.slane %v3519_v39, %v3518_v19  ;;  %v3568_v45 = vcombine.low %v3562_v33, %v3565_v34 }
 0xc78   :  { %3532 = vst.msk [vmem:[%s4803_s7] sm:$0x3] %vm3530_vm9, %v3526_v31  ;;  %v3575_v56 = vrot.slane %v3568_v45, %v3518_v19 }
 0xc7a   :  { %v3582_v7 = vrot.slane %v3575_v56, %v3518_v19 }
 0xc7c   :  { %3665 = vst.msk [vmem:[%s4803_s7 + $0x2] sm:$0x3] %vm3530_vm9, %v3582_v7 }

</bundles_post_ra>
